<compile_context>
chip_gen: v5e
topology: v5e:2x2
jax: 0.10.0
libtpu: 0.0.40
codegen_flags: <defaults>
</compile_context>

<pallas_src>
import functools

import jax
import jax.numpy as jnp
import numpy as np
from jax import lax
from jax.experimental import pallas as pl
from jax.experimental.pallas import tpu as pltpu


def _round_up(x, m):
    return (x + m - 1) // m * m


# bf16 weights halve the one-time weight DMA / VMEM residency; gate math stays
# f32.  Set to jnp.float32 for bit-closer parity with the reference.
_MATMUL_W_DTYPE = jnp.bfloat16


# ----------------------------- Pallas kernel ------------------------------

def _tree_level_kernel(child_slots_ref,  # SMEM (n_levels*L_pad*n_max,) int32  (scalar prefetch)
                       x_ref,            # VMEM (L_pad, in_p) f32      this level's inputs (streamed)
                       wx_ref,           # VMEM (in_p,  4*mem_p) bf16  [i|o|u|f] x-weights (resident)
                       wh_ref,           # VMEM (mem_p, 4*mem_p) bf16  [i|o|u|f] h-weights (resident)
                       iou_b_ref,        # VMEM (1, 3*mem_p) f32       ioux_b + iouh_b
                       f_b_ref,          # VMEM (1, mem_p)   f32       fx_b + fh_b
                       c_buf_ref,        # VMEM (n_rows, mem_p) f32    output, resident accumulator
                       h_buf_ref,        # VMEM (n_rows, mem_p) f32    output, resident accumulator
                       ch_h_ref,         # VMEM (n_max*L_pad, mem_p) f32  scratch (child h gather)
                       ch_c_ref,         # VMEM (n_max*L_pad, mem_p) f32  scratch (child c gather)
                       *, n_max, level_pad):
    m = c_buf_ref.shape[1]               # mem_p (multiple of 128)
    l = pl.program_id(0)

    # State buffers carried in VMEM across all levels; zero once (in particular
    # the trailing zero rows used for missing / padded children).
    @pl.when(l == 0)
    def _init():
        c_buf_ref[...] = jnp.zeros_like(c_buf_ref)
        h_buf_ref[...] = jnp.zeros_like(h_buf_ref)

    # ---- gather children of this level into sublane-dense scratch ----------
    # Layout: child j of the node at level position p goes to row j*L_pad + p,
    # so per-child group slices are static and 8-sublane aligned.
    base = l * (level_pad * n_max)

    def _gather_row(p, carry):
        for j in range(n_max):
            slot = child_slots_ref[base + p * n_max + j]
            dst = j * level_pad + p
            ch_h_ref[pl.ds(dst, 1), :] = h_buf_ref[pl.ds(slot, 1), :]
            ch_c_ref[pl.ds(dst, 1), :] = c_buf_ref[pl.ds(slot, 1), :]
        return carry

    lax.fori_loop(0, level_pad, _gather_row, 0)

    # ---- two fused MXU matmuls for the whole level --------------------------
    # (bf16 operands, f32 accumulation; all elementwise math below is f32)
    gx = jnp.dot(x_ref[...].astype(wx_ref.dtype), wx_ref[...],
                 preferred_element_type=jnp.float32)           # (L_pad, 4*m)
    gh = jnp.dot(ch_h_ref[...].astype(wh_ref.dtype), wh_ref[...],
                 preferred_element_type=jnp.float32)           # (n_max*L_pad, 4*m)

    # iou = ioux(x) + iouh(sum_children h); by linearity sum per-child gh rows.
    iou = gx[:, :3 * m] + iou_b_ref[...]
    for j in range(n_max):
        iou = iou + gh[j * level_pad:(j + 1) * level_pad, :3 * m]
    i_g = jax.nn.sigmoid(iou[:, :m])
    o_g = jax.nn.sigmoid(iou[:, m:2 * m])
    u_g = jnp.tanh(iou[:, 2 * m:])

    # f = sigmoid(fh(child_h) + fx(x) + f_b) per child; padded / missing
    # children have child_c == 0, so their (nonzero) f rows contribute nothing.
    gx_f = gx[:, 3 * m:] + f_b_ref[...]
    fc_sum = jnp.zeros((level_pad, m), jnp.float32)
    for j in range(n_max):
        f = jax.nn.sigmoid(gh[j * level_pad:(j + 1) * level_pad, 3 * m:] + gx_f)
        fc_sum = fc_sum + f * ch_c_ref[j * level_pad:(j + 1) * level_pad, :]

    c = i_g * u_g + fc_sum
    h = o_g * jnp.tanh(c)

    out = pl.multiple_of(l * level_pad, level_pad)   # 8-sublane aligned, unmasked stores
    c_buf_ref[pl.ds(out, level_pad), :] = c
    h_buf_ref[pl.ds(out, level_pad), :] = h


@functools.lru_cache(maxsize=None)
def _make_tree_forward(in_p, mem_p, n_max, n_levels, level_pad, n_rows, w_bytes):
    kernel = functools.partial(_tree_level_kernel, n_max=n_max, level_pad=level_pad)

    grid_spec = pltpu.PrefetchScalarGridSpec(
        num_scalar_prefetch=1,              # child_slots -> SMEM
        grid=(n_levels,),
        in_specs=[
            # x: streamed per level (auto double-buffered), NOT VMEM-resident.
            pl.BlockSpec((level_pad, in_p), lambda l, *_: (l, 0)),
            # Weights / biases: constant index maps -> DMA'd once, resident.
            pl.BlockSpec((in_p, 4 * mem_p), lambda l, *_: (0, 0)),
            pl.BlockSpec((mem_p, 4 * mem_p), lambda l, *_: (0, 0)),
            pl.BlockSpec((1, 3 * mem_p), lambda l, *_: (0, 0)),
            pl.BlockSpec((1, mem_p), lambda l, *_: (0, 0)),
        ],
        out_specs=(
            # Constant block index -> resident accumulators, written to HBM once.
            pl.BlockSpec((n_rows, mem_p), lambda l, *_: (0, 0)),   # c states
            pl.BlockSpec((n_rows, mem_p), lambda l, *_: (0, 0)),   # h states
        ),
        scratch_shapes=[
            pltpu.VMEM((n_max * level_pad, mem_p), jnp.float32),   # child h gather
            pltpu.VMEM((n_max * level_pad, mem_p), jnp.float32),   # child c gather
        ],
    )

    # Explicit VMEM budget from the real resident footprint (+ margin).
    resident = (in_p * 4 * mem_p * w_bytes             # wx
                + mem_p * 4 * mem_p * w_bytes          # wh
                + 8 * 4 * mem_p * 4                    # biases (sublane-padded)
                + 2 * n_rows * mem_p * 4               # c/h state accumulators
                + 2 * n_max * level_pad * mem_p * 4    # gather scratch
                + 2 * level_pad * in_p * 4)            # double-buffered x tile
    transient = 3 * (n_max + 1) * level_pad * 4 * mem_p * 4
    vmem_limit = int(min(48 * (1 << 20), max(8 * (1 << 20), 2 * (resident + transient))))

    call = pl.pallas_call(
        kernel,
        out_shape=(jax.ShapeDtypeStruct((n_rows, mem_p), jnp.float32),
                   jax.ShapeDtypeStruct((n_rows, mem_p), jnp.float32)),
        grid_spec=grid_spec,
        compiler_params=pltpu.CompilerParams(
            # Sequential: child states are carried in VMEM across levels.
            dimension_semantics=("arbitrary",),
            vmem_limit_bytes=vmem_limit),
    )

    @jax.jit
    def run(child_slots, x_sched, wx, wh, iou_b, f_b):
        return call(child_slots, x_sched, wx, wh, iou_b, f_b)

    return run


# --------------------------- Tree + module glue ----------------------------

class Tree:
    def __init__(self, node_id, children=()):
        self.id = node_id
        self.children = list(children)
        self.num_children = len(self.children)
        self.state = None


def _fuse_pad_params(p, in_dim, mem, in_p, mem_p, w_dtype):
    """Fuse 4 linears into 2 matmuls, pre-sum biases, pad gates to 128 lanes."""
    wx = np.zeros((in_p, 4 * mem_p), np.float32)
    wh = np.zeros((mem_p, 4 * mem_p), np.float32)
    ioux_w, iouh_w = np.asarray(p["ioux_w"]), np.asarray(p["iouh_w"])
    fx_w, fh_w = np.asarray(p["fx_w"]), np.asarray(p["fh_w"])
    for g in range(3):                       # i, o, u on 128-lane slab boundaries
        wx[:in_dim, g * mem_p:g * mem_p + mem] = ioux_w[:, g * mem:(g + 1) * mem]
        wh[:mem,    g * mem_p:g * mem_p + mem] = iouh_w[:, g * mem:(g + 1) * mem]
    wx[:in_dim, 3 * mem_p:3 * mem_p + mem] = fx_w
    wh[:mem,    3 * mem_p:3 * mem_p + mem] = fh_w

    iou_b = np.zeros((1, 3 * mem_p), np.float32)
    bsum = np.asarray(p["ioux_b"]) + np.asarray(p["iouh_b"])
    for g in range(3):
        iou_b[:, g * mem_p:g * mem_p + mem] = bsum[:, g * mem:(g + 1) * mem]
    f_b = np.zeros((1, mem_p), np.float32)
    f_b[:, :mem] = np.asarray(p["fx_b"]) + np.asarray(p["fh_b"])

    return (jnp.asarray(wx, w_dtype), jnp.asarray(wh, w_dtype),
            jnp.asarray(iou_b), jnp.asarray(f_b))


class TreeSummarize:
    """JAX/Pallas port of the PyTorch TreeSummarize module (level-batched)."""

    def __init__(self, in_dim, mem_dim, dropout1, n_max, key):
        self.in_dim = in_dim
        self.mem_dim = mem_dim
        self.n_max = n_max
        self.H = []
        # Lane-dense padded sizes (gate slices on vreg boundaries, unmasked stores).
        self.in_p = _round_up(in_dim, 128)
        self.mem_p = _round_up(mem_dim, 128)
        # TODO(synk): self.drop = Dropout(dropout1) is defined in the reference
        # __init__ but never applied in its forward pass, so it is omitted.

        ks = jax.random.split(key, 8)
        s = 0.1
        p = {
            "ioux_w": s * jax.random.normal(ks[0], (in_dim, 3 * mem_dim), jnp.float32),
            "ioux_b": s * jax.random.normal(ks[1], (1, 3 * mem_dim), jnp.float32),
            "iouh_w": s * jax.random.normal(ks[2], (mem_dim, 3 * mem_dim), jnp.float32),
            "iouh_b": s * jax.random.normal(ks[3], (1, 3 * mem_dim), jnp.float32),
            "fx_w": s * jax.random.normal(ks[4], (in_dim, mem_dim), jnp.float32),
            "fx_b": s * jax.random.normal(ks[5], (1, mem_dim), jnp.float32),
            "fh_w": s * jax.random.normal(ks[6], (mem_dim, mem_dim), jnp.float32),
            "fh_b": s * jax.random.normal(ks[7], (1, mem_dim), jnp.float32),
        }
        self.params = p
        self.wx, self.wh, self.iou_b, self.f_b = _fuse_pad_params(
            p, in_dim, mem_dim, self.in_p, self.mem_p, _MATMUL_W_DTYPE)

    @staticmethod
    def _postorder(tree, order):
        for ch in tree.children:
            TreeSummarize._postorder(ch, order)
        order.append(tree)

    def forward(self, data, record):
        tree, inputs = data[0], data[1]

        # ---- host-side flattening: post-order + level (wavefront) schedule ----
        order = []
        self._postorder(tree, order)

        # Validate fan-out BEFORE building the schedule.
        for node in order:
            if node.num_children > self.n_max:
                raise ValueError(
                    f"node {node.id} has {node.num_children} children > n_max={self.n_max}")

        level = {}
        for node in order:                      # post-order: children already leveled
            level[id(node)] = (0 if not node.children
                               else 1 + max(level[id(ch)] for ch in node.children))
        n_levels = max(level.values()) + 1
        by_level = [[] for _ in range(n_levels)]
        for node in order:
            by_level[level[id(node)]].append(node)
        level_pad = _round_up(max(len(lv) for lv in by_level), 8)

        total_slots = n_levels * level_pad
        zero_slot = total_slots                 # any row in the trailing zero block
        n_rows = total_slots + 8

        slot_of = {}
        node_of_slot = np.zeros((total_slots,), np.int32)
        slot_mask = np.zeros((total_slots, 1), np.float32)
        for lvl, nodes in enumerate(by_level):
            for pos, node in enumerate(nodes):
                slot = lvl * level_pad + pos
                slot_of[id(node)] = slot
                node_of_slot[slot] = node.id
                slot_mask[slot] = 1.0

        child_slots = np.full((total_slots * self.n_max,), zero_slot, np.int32)
        for node in order:
            s = slot_of[id(node)]
            for j, ch in enumerate(node.children):
                child_slots[s * self.n_max + j] = slot_of[id(ch)]

        # Pre-gather x into level-slot order (one device gather); padded slots -> 0.
        inputs = jnp.asarray(inputs, jnp.float32)
        x_rows = inputs[jnp.asarray(node_of_slot)] * jnp.asarray(slot_mask)
        x_sched = jnp.zeros((total_slots, self.in_p), jnp.float32)
        x_sched = x_sched.at[:, :self.in_dim].set(x_rows)

        run = _make_tree_forward(self.in_p, self.mem_p, self.n_max, n_levels,
                                 level_pad, n_rows,
                                 int(jnp.dtype(self.wx.dtype).itemsize))
        c_buf, h_buf = run(jnp.asarray(child_slots), x_sched,
                           self.wx, self.wh, self.iou_b, self.f_b)

        # ---- single bulk readback; host-side numpy slicing (no per-node ops) ----
        c_host, h_host = jax.device_get((c_buf, h_buf))
        for node in order:                      # reference post-order bookkeeping
            s = slot_of[id(node)]
            state = (c_host[s:s + 1, :self.mem_dim], h_host[s:s + 1, :self.mem_dim])
            node.state = state
            self.H.append(state[1])
            record[0].append(node.id)
            record[1].append(state)
        return tree.state, record


# ----------------------------- pure-JAX check ------------------------------

def _ref_node_forward(params, x_row, child_c, child_h, mem_dim):
    child_h_sum = jnp.sum(child_h, axis=0, keepdims=True)
    iou = (x_row @ params["ioux_w"] + params["ioux_b"]
           + child_h_sum @ params["iouh_w"] + params["iouh_b"])
    i = jax.nn.sigmoid(iou[:, :mem_dim])
    o = jax.nn.sigmoid(iou[:, mem_dim:2 * mem_dim])
    u = jnp.tanh(iou[:, 2 * mem_dim:])
    fx = x_row @ params["fx_w"] + params["fx_b"]
    fh = child_h @ params["fh_w"] + params["fh_b"]
    f = jax.nn.sigmoid(fh + fx)
    c = i * u + jnp.sum(f * child_c, axis=0, keepdims=True)
    h = o * jnp.tanh(c)
    return c, h


def _ref_forward(params, tree, inputs, mem_dim):
    child_states = [_ref_forward(params, ch, inputs, mem_dim) for ch in tree.children]
    if not child_states:
        child_c = jnp.zeros((1, mem_dim), jnp.float32)
        child_h = jnp.zeros((1, mem_dim), jnp.float32)
    else:
        child_c = jnp.concatenate([s[0] for s in child_states], axis=0)
        child_h = jnp.concatenate([s[1] for s in child_states], axis=0)
    return _ref_node_forward(params, inputs[tree.id:tree.id + 1],
                             child_c, child_h, mem_dim)


# --------------------------------- main ------------------------------------

if __name__ == "__main__":
    in_dim, mem_dim, n_max, n_inputs = 32, 32, 4, 5

    key = jax.random.PRNGKey(0)
    k_param, k_inp = jax.random.split(key)
    model = TreeSummarize(in_dim, mem_dim, dropout1=0.1, n_max=n_max, key=k_param)

    inputs = jax.random.normal(k_inp, (n_inputs, in_dim), jnp.float32)

    # small tree:      4
    #                 / \
    #                2   3
    #               / \
    #              0   1
    leaf0, leaf1, leaf3 = Tree(0), Tree(1), Tree(3)
    node2 = Tree(2, children=[leaf0, leaf1])
    root = Tree(4, children=[node2, leaf3])

    record = [[], []]
    (c_root, h_root), record = model.forward([root, inputs], record)

    # sanity-check against a pure-JAX (f32) reference of the same tree.
    # bf16 matmul operands in the kernel -> looser tolerance; f32 gate math.
    tol = 2e-2 if model.wx.dtype == jnp.bfloat16 else 1e-4
    c_ref, h_ref = _ref_forward(model.params, root, inputs, mem_dim)
    assert jnp.allclose(c_root, c_ref, atol=tol, rtol=tol), "c mismatch (root)"
    assert jnp.allclose(h_root, h_ref, atol=tol, rtol=tol), "h mismatch (root)"

    c2_ref, h2_ref = _ref_forward(model.params, node2, inputs, mem_dim)
    assert jnp.allclose(node2.state[0], c2_ref, atol=tol, rtol=tol), "c mismatch (node2)"
    assert jnp.allclose(node2.state[1], h2_ref, atol=tol, rtol=tol), "h mismatch (node2)"

    assert record[0] == [0, 1, 2, 3, 4]

    jax.block_until_ready(inputs)
    print("KERNEL_OK")
</pallas_src>

<mosaic_0001>
module attributes {stable_mosaic.version = 11 : i64} {
  func.func @_tree_level_kernel(%arg0: i32, %arg1: memref<96xi32, #tpu.memory_space<smem>>, %arg2: memref<8x128xf32, #tpu.memory_space<vmem>>, %arg3: memref<128x512xbf16, #tpu.memory_space<vmem>>, %arg4: memref<128x512xbf16, #tpu.memory_space<vmem>>, %arg5: memref<1x384xf32, #tpu.memory_space<vmem>>, %arg6: memref<1x128xf32, #tpu.memory_space<vmem>>, %arg7: memref<32x128xf32, #tpu.memory_space<vmem>>, %arg8: memref<32x128xf32, #tpu.memory_space<vmem>>, %arg9: memref<32x128xf32, #tpu.memory_space<vmem>>, %arg10: memref<32x128xf32, #tpu.memory_space<vmem>>) attributes {dimension_semantics = [#tpu.dimension_semantics<arbitrary>], iteration_bounds = array<i64: 3>, scalar_prefetch = 1 : i64, scratch_operands = 2 : i64, tpu.core_type = #tpu.core_type<tc>, window_params = [{transform_indices = @transform_0, window_bounds = array<i64: 8, 128>}, {pipeline_mode = #tpu.pipeline_mode<synchronous>, transform_indices = @transform_1, window_bounds = array<i64: 128, 512>}, {pipeline_mode = #tpu.pipeline_mode<synchronous>, transform_indices = @transform_2, window_bounds = array<i64: 128, 512>}, {pipeline_mode = #tpu.pipeline_mode<synchronous>, transform_indices = @transform_3, window_bounds = array<i64: 1, 384>}, {pipeline_mode = #tpu.pipeline_mode<synchronous>, transform_indices = @transform_4, window_bounds = array<i64: 1, 128>}, {pipeline_mode = #tpu.pipeline_mode<synchronous>, transform_indices = @transform_5, window_bounds = array<i64: 32, 128>}, {pipeline_mode = #tpu.pipeline_mode<synchronous>, transform_indices = @transform_6, window_bounds = array<i64: 32, 128>}]} {
    %c0_i32 = arith.constant 0 : i32
    %0 = arith.cmpi eq, %arg0, %c0_i32 : i32
    %1 = arith.extui %0 : i1 to i32
    %c0_i32_0 = arith.constant 0 : i32
    %2 = arith.cmpi ne, %1, %c0_i32_0 : i32
    scf.if %2 {
      %cst_30 = arith.constant 0.000000e+00 : f32
      %94 = vector.broadcast %cst_30 : f32 to vector<32x128xf32>
      %c0_31 = arith.constant 0 : index
      %c0_32 = arith.constant 0 : index
      %95 = vector.load %arg7[%c0_31, %c0_32] : memref<32x128xf32, #tpu.memory_space<vmem>>, vector<32x128xf32>
      tpu.vector_store %arg7[%c0_31, %c0_32], %94 {strides = array<i32>} : memref<32x128xf32, #tpu.memory_space<vmem>>, vector<32x128xf32>,
      %cst_33 = arith.constant 0.000000e+00 : f32
      %96 = vector.broadcast %cst_33 : f32 to vector<32x128xf32>
      %c0_34 = arith.constant 0 : index
      %c0_35 = arith.constant 0 : index
      %97 = vector.load %arg8[%c0_34, %c0_35] : memref<32x128xf32, #tpu.memory_space<vmem>>, vector<32x128xf32>
      tpu.vector_store %arg8[%c0_34, %c0_35], %96 {strides = array<i32>} : memref<32x128xf32, #tpu.memory_space<vmem>>, vector<32x128xf32>,
    } else {
    }
    %c32_i32 = arith.constant 32 : i32
    %3 = arith.muli %arg0, %c32_i32 : i32
    %c0_i32_1 = arith.constant 0 : i32
    %c8_i32 = arith.constant 8 : i32
    %4 = arith.addi %c0_i32_1, %c8_i32 : i32
    %c1_i32 = arith.constant 1 : i32
    scf.for %arg11 = %c0_i32_1 to %4 step %c1_i32  : i32 {
      %c4_i32 = arith.constant 4 : i32
      %94 = arith.muli %arg11, %c4_i32 : i32
      %95 = arith.addi %3, %94 : i32
      %c0_i32_30 = arith.constant 0 : i32
      %96 = arith.addi %95, %c0_i32_30 : i32
      %97 = arith.index_cast %96 : i32 to index
      %98 = memref.load %arg1[%97] : memref<96xi32, #tpu.memory_space<smem>>
      %c0_i32_31 = arith.constant 0 : i32
      %99 = arith.addi %c0_i32_31, %arg11 : i32
      %100 = arith.index_cast %98 : i32 to index
      %c0_32 = arith.constant 0 : index
      %101 = vector.load %arg8[%100, %c0_32] : memref<32x128xf32, #tpu.memory_space<vmem>>, vector<1x128xf32>
      %102 = arith.index_cast %99 : i32 to index
      %c0_33 = arith.constant 0 : index
      %103 = vector.load %arg9[%102, %c0_33] : memref<32x128xf32, #tpu.memory_space<vmem>>, vector<1x128xf32>
      tpu.vector_store %arg9[%102, %c0_33], %101 {strides = array<i32>} : memref<32x128xf32, #tpu.memory_space<vmem>>, vector<1x128xf32>,
      %104 = arith.index_cast %98 : i32 to index
      %c0_34 = arith.constant 0 : index
      %105 = vector.load %arg7[%104, %c0_34] : memref<32x128xf32, #tpu.memory_space<vmem>>, vector<1x128xf32>
      %106 = arith.index_cast %99 : i32 to index
      %c0_35 = arith.constant 0 : index
      %107 = vector.load %arg10[%106, %c0_35] : memref<32x128xf32, #tpu.memory_space<vmem>>, vector<1x128xf32>
      tpu.vector_store %arg10[%106, %c0_35], %105 {strides = array<i32>} : memref<32x128xf32, #tpu.memory_space<vmem>>, vector<1x128xf32>,
      %c4_i32_36 = arith.constant 4 : i32
      %108 = arith.muli %arg11, %c4_i32_36 : i32
      %109 = arith.addi %3, %108 : i32
      %c1_i32_37 = arith.constant 1 : i32
      %110 = arith.addi %109, %c1_i32_37 : i32
      %111 = arith.index_cast %110 : i32 to index
      %112 = memref.load %arg1[%111] : memref<96xi32, #tpu.memory_space<smem>>
      %c8_i32_38 = arith.constant 8 : i32
      %113 = arith.addi %c8_i32_38, %arg11 : i32
      %114 = arith.index_cast %112 : i32 to index
      %c0_39 = arith.constant 0 : index
      %115 = vector.load %arg8[%114, %c0_39] : memref<32x128xf32, #tpu.memory_space<vmem>>, vector<1x128xf32>
      %116 = arith.index_cast %113 : i32 to index
      %c0_40 = arith.constant 0 : index
      %117 = vector.load %arg9[%116, %c0_40] : memref<32x128xf32, #tpu.memory_space<vmem>>, vector<1x128xf32>
      tpu.vector_store %arg9[%116, %c0_40], %115 {strides = array<i32>} : memref<32x128xf32, #tpu.memory_space<vmem>>, vector<1x128xf32>,
      %118 = arith.index_cast %112 : i32 to index
      %c0_41 = arith.constant 0 : index
      %119 = vector.load %arg7[%118, %c0_41] : memref<32x128xf32, #tpu.memory_space<vmem>>, vector<1x128xf32>
      %120 = arith.index_cast %113 : i32 to index
      %c0_42 = arith.constant 0 : index
      %121 = vector.load %arg10[%120, %c0_42] : memref<32x128xf32, #tpu.memory_space<vmem>>, vector<1x128xf32>
      tpu.vector_store %arg10[%120, %c0_42], %119 {strides = array<i32>} : memref<32x128xf32, #tpu.memory_space<vmem>>, vector<1x128xf32>,
      %c4_i32_43 = arith.constant 4 : i32
      %122 = arith.muli %arg11, %c4_i32_43 : i32
      %123 = arith.addi %3, %122 : i32
      %c2_i32 = arith.constant 2 : i32
      %124 = arith.addi %123, %c2_i32 : i32
      %125 = arith.index_cast %124 : i32 to index
      %126 = memref.load %arg1[%125] : memref<96xi32, #tpu.memory_space<smem>>
      %c16_i32 = arith.constant 16 : i32
      %127 = arith.addi %c16_i32, %arg11 : i32
      %128 = arith.index_cast %126 : i32 to index
      %c0_44 = arith.constant 0 : index
      %129 = vector.load %arg8[%128, %c0_44] : memref<32x128xf32, #tpu.memory_space<vmem>>, vector<1x128xf32>
      %130 = arith.index_cast %127 : i32 to index
      %c0_45 = arith.constant 0 : index
      %131 = vector.load %arg9[%130, %c0_45] : memref<32x128xf32, #tpu.memory_space<vmem>>, vector<1x128xf32>
      tpu.vector_store %arg9[%130, %c0_45], %129 {strides = array<i32>} : memref<32x128xf32, #tpu.memory_space<vmem>>, vector<1x128xf32>,
      %132 = arith.index_cast %126 : i32 to index
      %c0_46 = arith.constant 0 : index
      %133 = vector.load %arg7[%132, %c0_46] : memref<32x128xf32, #tpu.memory_space<vmem>>, vector<1x128xf32>
      %134 = arith.index_cast %127 : i32 to index
      %c0_47 = arith.constant 0 : index
      %135 = vector.load %arg10[%134, %c0_47] : memref<32x128xf32, #tpu.memory_space<vmem>>, vector<1x128xf32>
      tpu.vector_store %arg10[%134, %c0_47], %133 {strides = array<i32>} : memref<32x128xf32, #tpu.memory_space<vmem>>, vector<1x128xf32>,
      %c4_i32_48 = arith.constant 4 : i32
      %136 = arith.muli %arg11, %c4_i32_48 : i32
      %137 = arith.addi %3, %136 : i32
      %c3_i32 = arith.constant 3 : i32
      %138 = arith.addi %137, %c3_i32 : i32
      %139 = arith.index_cast %138 : i32 to index
      %140 = memref.load %arg1[%139] : memref<96xi32, #tpu.memory_space<smem>>
      %c24_i32 = arith.constant 24 : i32
      %141 = arith.addi %c24_i32, %arg11 : i32
      %142 = arith.index_cast %140 : i32 to index
      %c0_49 = arith.constant 0 : index
      %143 = vector.load %arg8[%142, %c0_49] : memref<32x128xf32, #tpu.memory_space<vmem>>, vector<1x128xf32>
      %144 = arith.index_cast %141 : i32 to index
      %c0_50 = arith.constant 0 : index
      %145 = vector.load %arg9[%144, %c0_50] : memref<32x128xf32, #tpu.memory_space<vmem>>, vector<1x128xf32>
      tpu.vector_store %arg9[%144, %c0_50], %143 {strides = array<i32>} : memref<32x128xf32, #tpu.memory_space<vmem>>, vector<1x128xf32>,
      %146 = arith.index_cast %140 : i32 to index
      %c0_51 = arith.constant 0 : index
      %147 = vector.load %arg7[%146, %c0_51] : memref<32x128xf32, #tpu.memory_space<vmem>>, vector<1x128xf32>
      %148 = arith.index_cast %141 : i32 to index
      %c0_52 = arith.constant 0 : index
      %149 = vector.load %arg10[%148, %c0_52] : memref<32x128xf32, #tpu.memory_space<vmem>>, vector<1x128xf32>
      tpu.vector_store %arg10[%148, %c0_52], %147 {strides = array<i32>} : memref<32x128xf32, #tpu.memory_space<vmem>>, vector<1x128xf32>,
    }
    %c8_i32_2 = arith.constant 8 : i32
    %c0 = arith.constant 0 : index
    %c0_3 = arith.constant 0 : index
    %5 = vector.load %arg2[%c0, %c0_3] : memref<8x128xf32, #tpu.memory_space<vmem>>, vector<8x128xf32>
    %6 = arith.truncf %5 : vector<8x128xf32> to vector<8x128xbf16>
    %c0_4 = arith.constant 0 : index
    %c0_5 = arith.constant 0 : index
    %7 = vector.load %arg3[%c0_4, %c0_5] : memref<128x512xbf16, #tpu.memory_space<vmem>>, vector<128x512xbf16>
    %cst = arith.constant dense<0.000000e+00> : vector<8x512xf32>
    %8 = tpu.matmul %6, %7, %cst {dimension_numbers = #tpu.dot_dimension_numbers<[1], [0], [0], [1], [0, 0, 1, 1], [], []>} : vector<8x128xbf16>, vector<128x512xbf16>, vector<8x512xf32> -> vector<8x512xf32>
    %c0_6 = arith.constant 0 : index
    %c0_7 = arith.constant 0 : index
    %9 = vector.load %arg9[%c0_6, %c0_7] : memref<32x128xf32, #tpu.memory_space<vmem>>, vector<32x128xf32>
    %10 = arith.truncf %9 : vector<32x128xf32> to vector<32x128xbf16>
    %c0_8 = arith.constant 0 : index
    %c0_9 = arith.constant 0 : index
    %11 = vector.load %arg4[%c0_8, %c0_9] : memref<128x512xbf16, #tpu.memory_space<vmem>>, vector<128x512xbf16>
    %cst_10 = arith.constant dense<0.000000e+00> : vector<32x512xf32>
    %12 = tpu.matmul %10, %11, %cst_10 {dimension_numbers = #tpu.dot_dimension_numbers<[1], [0], [0], [1], [0, 0, 1, 1], [], []>} : vector<32x128xbf16>, vector<128x512xbf16>, vector<32x512xf32> -> vector<32x512xf32>
    %13 = vector.extract_strided_slice %8 {offsets = [0, 0], sizes = [8, 384], strides = [1, 1]} : vector<8x512xf32> to vector<8x384xf32>
    %c0_11 = arith.constant 0 : index
    %c0_12 = arith.constant 0 : index
    %14 = vector.load %arg5[%c0_11, %c0_12] : memref<1x384xf32, #tpu.memory_space<vmem>>, vector<1x384xf32>
    %15 = vector.broadcast %14 : vector<1x384xf32> to vector<8x384xf32>
    %16 = arith.addf %13, %15 : vector<8x384xf32>
    %17 = vector.extract_strided_slice %12 {offsets = [0, 0], sizes = [8, 384], strides = [1, 1]} : vector<32x512xf32> to vector<8x384xf32>
    %18 = arith.addf %16, %17 : vector<8x384xf32>
    %19 = vector.extract_strided_slice %12 {offsets = [8, 0], sizes = [8, 384], strides = [1, 1]} : vector<32x512xf32> to vector<8x384xf32>
    %20 = arith.addf %18, %19 : vector<8x384xf32>
    %21 = vector.extract_strided_slice %12 {offsets = [16, 0], sizes = [8, 384], strides = [1, 1]} : vector<32x512xf32> to vector<8x384xf32>
    %22 = arith.addf %20, %21 : vector<8x384xf32>
    %23 = vector.extract_strided_slice %12 {offsets = [24, 0], sizes = [8, 384], strides = [1, 1]} : vector<32x512xf32> to vector<8x384xf32>
    %24 = arith.addf %22, %23 : vector<8x384xf32>
    %25 = vector.extract_strided_slice %24 {offsets = [0, 0], sizes = [8, 128], strides = [1, 1]} : vector<8x384xf32> to vector<8x128xf32>
    %26 = arith.negf %25 : vector<8x128xf32>
    %27 = math.exp %26 : vector<8x128xf32>
    %cst_13 = arith.constant 1.000000e+00 : f32
    %28 = vector.broadcast %cst_13 : f32 to vector<8x128xf32>
    %29 = arith.addf %28, %27 : vector<8x128xf32>
    %30 = arith.divf %28, %29 : vector<8x128xf32>
    %31 = vector.extract_strided_slice %24 {offsets = [0, 128], sizes = [8, 128], strides = [1, 1]} : vector<8x384xf32> to vector<8x128xf32>
    %32 = arith.negf %31 : vector<8x128xf32>
    %33 = math.exp %32 : vector<8x128xf32>
    %cst_14 = arith.constant 1.000000e+00 : f32
    %34 = vector.broadcast %cst_14 : f32 to vector<8x128xf32>
    %35 = arith.addf %34, %33 : vector<8x128xf32>
    %36 = arith.divf %34, %35 : vector<8x128xf32>
    %37 = vector.extract_strided_slice %24 {offsets = [0, 256], sizes = [8, 128], strides = [1, 1]} : vector<8x384xf32> to vector<8x128xf32>
    %38 = math.tanh %37 : vector<8x128xf32>
    %39 = vector.extract_strided_slice %8 {offsets = [0, 384], sizes = [8, 128], strides = [1, 1]} : vector<8x512xf32> to vector<8x128xf32>
    %c0_15 = arith.constant 0 : index
    %c0_16 = arith.constant 0 : index
    %40 = vector.load %arg6[%c0_15, %c0_16] : memref<1x128xf32, #tpu.memory_space<vmem>>, vector<1x128xf32>
    %41 = vector.broadcast %40 : vector<1x128xf32> to vector<8x128xf32>
    %42 = arith.addf %39, %41 : vector<8x128xf32>
    %cst_17 = arith.constant 0.000000e+00 : f32
    %43 = vector.broadcast %cst_17 : f32 to vector<8x128xf32>
    %44 = vector.extract_strided_slice %12 {offsets = [0, 384], sizes = [8, 128], strides = [1, 1]} : vector<32x512xf32> to vector<8x128xf32>
    %45 = arith.addf %44, %42 : vector<8x128xf32>
    %46 = arith.negf %45 : vector<8x128xf32>
    %47 = math.exp %46 : vector<8x128xf32>
    %cst_18 = arith.constant 1.000000e+00 : f32
    %48 = vector.broadcast %cst_18 : f32 to vector<8x128xf32>
    %49 = arith.addf %48, %47 : vector<8x128xf32>
    %50 = arith.divf %48, %49 : vector<8x128xf32>
    %c0_19 = arith.constant 0 : index
    %c0_20 = arith.constant 0 : index
    %51 = vector.load %arg10[%c0_19, %c0_20] : memref<32x128xf32, #tpu.memory_space<vmem>>, vector<8x128xf32>
    %52 = arith.mulf %50, %51 : vector<8x128xf32>
    %53 = arith.addf %43, %52 : vector<8x128xf32>
    %54 = vector.extract_strided_slice %12 {offsets = [8, 384], sizes = [8, 128], strides = [1, 1]} : vector<32x512xf32> to vector<8x128xf32>
    %55 = arith.addf %54, %42 : vector<8x128xf32>
    %56 = arith.negf %55 : vector<8x128xf32>
    %57 = math.exp %56 : vector<8x128xf32>
    %cst_21 = arith.constant 1.000000e+00 : f32
    %58 = vector.broadcast %cst_21 : f32 to vector<8x128xf32>
    %59 = arith.addf %58, %57 : vector<8x128xf32>
    %60 = arith.divf %58, %59 : vector<8x128xf32>
    %c8 = arith.constant 8 : index
    %c0_22 = arith.constant 0 : index
    %61 = vector.load %arg10[%c8, %c0_22] : memref<32x128xf32, #tpu.memory_space<vmem>>, vector<8x128xf32>
    %62 = arith.mulf %60, %61 : vector<8x128xf32>
    %63 = arith.addf %53, %62 : vector<8x128xf32>
    %64 = vector.extract_strided_slice %12 {offsets = [16, 384], sizes = [8, 128], strides = [1, 1]} : vector<32x512xf32> to vector<8x128xf32>
    %65 = arith.addf %64, %42 : vector<8x128xf32>
    %66 = arith.negf %65 : vector<8x128xf32>
    %67 = math.exp %66 : vector<8x128xf32>
    %cst_23 = arith.constant 1.000000e+00 : f32
    %68 = vector.broadcast %cst_23 : f32 to vector<8x128xf32>
    %69 = arith.addf %68, %67 : vector<8x128xf32>
    %70 = arith.divf %68, %69 : vector<8x128xf32>
    %c16 = arith.constant 16 : index
    %c0_24 = arith.constant 0 : index
    %71 = vector.load %arg10[%c16, %c0_24] : memref<32x128xf32, #tpu.memory_space<vmem>>, vector<8x128xf32>
    %72 = arith.mulf %70, %71 : vector<8x128xf32>
    %73 = arith.addf %63, %72 : vector<8x128xf32>
    %74 = vector.extract_strided_slice %12 {offsets = [24, 384], sizes = [8, 128], strides = [1, 1]} : vector<32x512xf32> to vector<8x128xf32>
    %75 = arith.addf %74, %42 : vector<8x128xf32>
    %76 = arith.negf %75 : vector<8x128xf32>
    %77 = math.exp %76 : vector<8x128xf32>
    %cst_25 = arith.constant 1.000000e+00 : f32
    %78 = vector.broadcast %cst_25 : f32 to vector<8x128xf32>
    %79 = arith.addf %78, %77 : vector<8x128xf32>
    %80 = arith.divf %78, %79 : vector<8x128xf32>
    %c24 = arith.constant 24 : index
    %c0_26 = arith.constant 0 : index
    %81 = vector.load %arg10[%c24, %c0_26] : memref<32x128xf32, #tpu.memory_space<vmem>>, vector<8x128xf32>
    %82 = arith.mulf %80, %81 : vector<8x128xf32>
    %83 = arith.addf %73, %82 : vector<8x128xf32>
    %84 = arith.mulf %30, %38 : vector<8x128xf32>
    %85 = arith.addf %84, %83 : vector<8x128xf32>
    %86 = math.tanh %85 : vector<8x128xf32>
    %87 = arith.mulf %36, %86 : vector<8x128xf32>
    %c8_i32_27 = arith.constant 8 : i32
    %88 = arith.muli %arg0, %c8_i32_27 : i32
    %89 = tpu.assume_multiple %88, 8 : i32
    %90 = arith.index_cast %89 : i32 to index
    %c0_28 = arith.constant 0 : index
    %91 = vector.load %arg7[%90, %c0_28] : memref<32x128xf32, #tpu.memory_space<vmem>>, vector<8x128xf32>
    tpu.vector_store %arg7[%90, %c0_28], %85 {strides = array<i32>} : memref<32x128xf32, #tpu.memory_space<vmem>>, vector<8x128xf32>,
    %92 = arith.index_cast %89 : i32 to index
    %c0_29 = arith.constant 0 : index
    %93 = vector.load %arg8[%92, %c0_29] : memref<32x128xf32, #tpu.memory_space<vmem>>, vector<8x128xf32>
    tpu.vector_store %arg8[%92, %c0_29], %87 {strides = array<i32>} : memref<32x128xf32, #tpu.memory_space<vmem>>, vector<8x128xf32>,
    return
  }
  func.func @transform_0(%arg0: i32, %arg1: memref<96xi32, #tpu.memory_space<smem>>) -> (i32, i32) {
    %c0_i32 = arith.constant 0 : i32
    %c0_i32_0 = arith.constant 0 : i32
    return %arg0, %c0_i32 : i32, i32
  }
  func.func @transform_1(%arg0: i32, %arg1: memref<96xi32, #tpu.memory_space<smem>>) -> (i32, i32) {
    %c0_i32 = arith.constant 0 : i32
    %c0_i32_0 = arith.constant 0 : i32
    %c0_i32_1 = arith.constant 0 : i32
    return %c0_i32, %c0_i32_0 : i32, i32
  }
  func.func @transform_2(%arg0: i32, %arg1: memref<96xi32, #tpu.memory_space<smem>>) -> (i32, i32) {
    %c0_i32 = arith.constant 0 : i32
    %c0_i32_0 = arith.constant 0 : i32
    %c0_i32_1 = arith.constant 0 : i32
    return %c0_i32, %c0_i32_0 : i32, i32
  }
  func.func @transform_3(%arg0: i32, %arg1: memref<96xi32, #tpu.memory_space<smem>>) -> (i32, i32) {
    %c0_i32 = arith.constant 0 : i32
    %c0_i32_0 = arith.constant 0 : i32
    %c0_i32_1 = arith.constant 0 : i32
    return %c0_i32, %c0_i32_0 : i32, i32
  }
  func.func @transform_4(%arg0: i32, %arg1: memref<96xi32, #tpu.memory_space<smem>>) -> (i32, i32) {
    %c0_i32 = arith.constant 0 : i32
    %c0_i32_0 = arith.constant 0 : i32
    %c0_i32_1 = arith.constant 0 : i32
    return %c0_i32, %c0_i32_0 : i32, i32
  }
  func.func @transform_5(%arg0: i32, %arg1: memref<96xi32, #tpu.memory_space<smem>>) -> (i32, i32) {
    %c0_i32 = arith.constant 0 : i32
    %c0_i32_0 = arith.constant 0 : i32
    %c0_i32_1 = arith.constant 0 : i32
    return %c0_i32, %c0_i32_0 : i32, i32
  }
  func.func @transform_6(%arg0: i32, %arg1: memref<96xi32, #tpu.memory_space<smem>>) -> (i32, i32) {
    %c0_i32 = arith.constant 0 : i32
    %c0_i32_0 = arith.constant 0 : i32
    %c0_i32_1 = arith.constant 0 : i32
    return %c0_i32, %c0_i32_0 : i32, i32
  }
}

</mosaic_0001>

<bundles_post_ra>
// kernel: run.1
= control target key start
LH: loop header
LB: loop body
LE: loop exit
PB: predicated region body
PF: predicated region fallthrough
CT: control target
= control target key end

     0   :  { %s1872_s27 = smov [#allocation5]   ;;  %s2178_s0 = inlined_call_operand.hbm [shape: s32[96], index: 0, kind: input, shape index: {}]   ;;  %s2179_s1 = inlined_call_operand.hbm [shape: f32[24,128], index: 1, kind: input, shape index: {}]   ;;  %s2180_s2 = inlined_call_operand.hbm [shape: bf16[128,512], index: 2, kind: input, shape index: {}]   ;;  %s2181_s3 = inlined_call_operand.hbm [shape: bf16[128,512], index: 3, kind: input, shape index: {}]   ;;  %s2182_s4 = inlined_call_operand.vmem [shape: f32[1,384], index: 4, kind: input, shape index: {}]   ;;  %s2183_s5 = inlined_call_operand.vmem [shape: f32[1,128], index: 5, kind: input, shape index: {}]   ;;  %s2184_s6 = inlined_call_operand.hbm [shape: f32[32,128], index: 6, kind: output, shape index: {0}]   ;;  %s2185_s7 = inlined_call_operand.hbm [shape: f32[32,128], index: 7, kind: output, shape index: {1}]  }
   0x1   :  { %s14_s26 = sshll.u32 %s2178_s0, 4  ;;  %s15_s26 = int_to_ptr.hbm [resolvable:$true] %s14_s26 }
   0x2   :  { %17 = dma.hbm_to_smem %s15_s26, 16, %s1872_s27, [#allocation4] }
   0x3   :  { %1834 = dma.done.wait [#allocation4], 16 }
   0x4   :  { %1835 = vsyncadd [#allocation4], 4294967280 }
   0x5   :  { %20 = sfence }
   0x6   :  { %21 = vsyncpa [#allocation7], 0 }
   0x7   :  { %23 = vsyncpa [#allocation7 + $0x1], 0 }
   0x8   :  { %24 = vsyncpa [#allocation10], 0 }
   0x9   :  { %25 = vsyncpa [#allocation8], 0 }
   0xa   :  { %26 = vsyncpa [#allocation14], 0  ;;  %s1925_s28 = smov 0   ;;  %s1927_s29 = smov 0  }
   0xb   :  { %s1929_s30 = smov 0   ;;  %s1931_s8 = smov 0  }
   0xc LB: > { %s200_s10 = sshll.u32 %s2180_s2, 4  ;;  %s1949_s11 = sadd.s32 4294967295, %s1866_s8   ;;  %s1866_s8 = sphi %s1931_s8, %s2200_s8   ;;  %s1862_s30 = sphi %s1929_s30, %s2199_s30   ;;  %s1858_s29 = sphi %s1927_s29, %s2198_s29   ;;  %s1854_s28 = sphi %s1925_s28, %s2197_s28   ;;  %s201_s10 = int_to_ptr.hbm [resolvable:$true] %s200_s10 }
   0xd   : > { %p1187_p0 = scmp.ge.s32.totalorder %s1866_s8, 1  ;;  %p53_p1 = scmp.eq.s32.totalorder %s1949_s11, 0 }
   0xe   : > { %p189_p2 = scmp.lt.s32.totalorder %s1866_s8, 4  ;;  %p1188_p3 = scmp.ne.s32.totalorder %s1949_s11, 0 }
   0xf   : > { %s1873_s13 = smov [#allocation9]   ;;  %s214_s17 = sshll.u32 %s2181_s3, 4  ;;  %s215_s17 = int_to_ptr.hbm [resolvable:$true] %s214_s17 }
  0x10   : > { %p1955_p4 = pnand %p1187_p0, %p189_p2  ;;  %s202_s14 = sshll.u32 %s1873_s13, 4  ;;  %s203_s14 = int_to_ptr.vmem [resolvable:$true] %s202_s14 }
  0x11   : > { %s1874_s18 = smov [#allocation11]   ;;  %s1875_s20 = smov 256  }
  0x12   : > { %p1557_p5 = pneg %p1955_p4  ;;  %s216_s19 = sshll.u32 %s1874_s18, 4  ;;  %s217_s19 = int_to_ptr.vmem [resolvable:$true] %s216_s19 }
  0x13   : > { %s1876_s21 = smov 16   ;;  %s1967_s22 = sadd.s32 1, %s1866_s8  }
  0x14   : > { %p1558_p6 = pnand %p1557_p5, %p53_p1  ;;  %s36_s23 = ssub.s32 %s1866_s8, %s1967_s22 }
  0x15   : > { %s39_s24 = sadd.s32 1, %s1862_s30  ;;  %p37_p7 = scmp.eq.s32.totalorder %s36_s23, 0 }
  0x16   : > { %1560 = dma.hbm_to_vmem [thread:$0]  (!%p1558_p6), %s201_s10, 4096, %s203_s14, [#allocation10], %s1875_s20, %s1875_s20, %s1876_s21  }
  0x17   : > { %1563 = dma.hbm_to_vmem [thread:$0]  (!%p1558_p6), %s215_s17, 4096, %s217_s19, [#allocation10], %s1875_s20, %s1875_s20, %s1876_s21  }
  0x18   : > { %p46_p8 = scmp.ne.s32.totalorder %s1862_s30, %s1858_s29  ;;  %p47_p9 = scmp.eq.s32.totalorder %s1866_s8, 0 }
  0x19   : > { %p52_p10 = scmp.ne.s32.totalorder %s1858_s29, %s1854_s28  ;;  %p1570_p12 = scmp.lt.s32.totalorder %s1866_s8, 3 }
  0x1a   : > { %s1978_s25 = scalar_select %p37_p7, %s1862_s30, %s39_s24  }
  0x1b   : > { %p1982_p11 = por %p53_p1, %p52_p10  ;;  %s236_s27 = sand.u32 1, %s1862_s30  }
  0x1c   : > { %s1192_s0 = sshll.u32 %s1866_s8, 3  ;;  %p48_p13 = por %p47_p9, %p46_p8 }
  0x1d   : > { %s1191_s9 = sshll.u32 %s236_s27, 3  ;;  %s244_s14 = scalar_lea.hbm %s2179_s1, %s1192_s0 }
  0x1e   : > { %s246_s15 = sshll.u32 %s244_s14, 4  ;;  %s240_s16 = scalar_lea.vmem [#allocation6], %s1191_s9  ;;  %s247_s15 = int_to_ptr.hbm [resolvable:$true] %s246_s15 }
  0x1f   : > { %s248_s17 = sshll.u32 %s240_s16, 4  ;;  %p1992_p0 = pnand %p1570_p12, %p48_p13  ;;  %s249_s17 = int_to_ptr.vmem [resolvable:$true] %s248_s17 }
  0x20   : > { %s237_s18 = scalar_lea.sflag [#allocation7], %s236_s27  ;;  %s1728_s19 = sshra.s32 %s247_s15, 4  ;;  %s1729_s19 = int_to_ptr.hbm [resolvable:$true] %s1728_s19 }
  0x21   : > { %s1730_s8 = scalar_lea.hbm %s1729_s19, 8  ;;  %p1732_p5 = pneg %p1992_p0 }
  0x22   : > { %p1731_p2 = scmp.ne.s32.totalorder %s1729_s19, %s1730_s8  ;;  %s1735_s23 = scalar_lea.hbm %s2179_s1, 24 }
  0x23   : > { %p1736_p8 = scmp.lt.s32.totalorder %s1729_s19, %s2179_s1  ;;  %p1737_p9 = scmp.lt.s32.totalorder %s1735_s23, %s1730_s8 }
  0x24   : > { %p1733_p6 = pnand %p1732_p5, %p1731_p2 }
  0x25   : > { %p1738_p10 = por %p1737_p9, %p1736_p8 }
  0x26   : > { %p1734_p7 = pneg %p1733_p6 }
  0x28   : > { %p1739_p12 = pnand %p1738_p10, %p1734_p7 }
  0x2a   : > { %1742 = shalt.err (!%p1739_p12)
}
  0x2b   : > { %1567 = dma.hbm_to_vmem [thread:$0]  (!%p1992_p0), %s247_s15, 128, %s249_s17, %s237_s18  }
  0x2c   : > { %257 = sbr.rel (%p1955_p4) target bundleno = 355 (0x163), region = 40  ;;  %s259_s27 = sand.u32 (!%p1955_p4), 1, %s1858_s29  }
  0x2d   : > { %s2009_s9 = sshll.u32 (!%p1955_p4), %s259_s27, 3  ;;  %s260_s10 = scalar_lea.sflag (!%p1955_p4), [#allocation7], %s259_s27 }
  0x2e   : > { %s263_s13 = scalar_lea.vmem (!%p1955_p4), [#allocation6], %s2009_s9 }
  0x31   : > { %1837 = dma.done.wait (%p1982_p11), %s260_s10, 128  }
  0x32   : > { %1839 = vsyncadd (%p1982_p11), %s260_s10, 4294967168 }
  0x33   : > { %1841 = dma.done.wait (%p53_p1), [#allocation10], 8192  }
  0x34   : > { %1843 = vsyncadd (%p53_p1), [#allocation10], 4294959104  ;;  %301 = sbr.rel (%p1188_p3) target bundleno = 66 (0x42), region = 56 }
  0x39   : > { %v1877_v0 = vmov 0.0  }
  0x3a   : > { %302 = vst [vmem:[#allocation12] sm:$0xff] %v1877_v0 }
  0x3b   : > { %303 = vst [vmem:[#allocation12 + $0x8] sm:$0xff] %v1877_v0 }
  0x3c   : > { %304 = vst [vmem:[#allocation12 + $0x10] sm:$0xff] %v1877_v0 }
  0x3d   : > { %305 = vst [vmem:[#allocation12 + $0x18] sm:$0xff] %v1877_v0 }
  0x3e   : > { %306 = vst [vmem:[#allocation13] sm:$0xff] %v1877_v0 }
  0x3f   : > { %307 = vst [vmem:[#allocation13 + $0x8] sm:$0xff] %v1877_v0 }
  0x40   : > { %308 = vst [vmem:[#allocation13 + $0x10] sm:$0xff] %v1877_v0 }
  0x41   : > { %309 = vst [vmem:[#allocation13 + $0x18] sm:$0xff] %v1877_v0 }
  0x42 PF: > { %s1198_s12 = sshll.u32 %s1949_s11, 5  ;;  %s2023_s26 = smov 0  }
  0x43 LB: >> { %s1199_s14 = sshll.u32 %s1870_s26, 2  ;;  %s322_s24 = scalar_lea.vmem [#allocation2], %s1870_s26  ;;  %s1870_s26 = sphi %s2023_s26, %s316_s26  }
  0x44   : >> { %s318_s15 = sadd.s32 %s1199_s14, %s1198_s12  ;;  %s326_s10 = scalar_lea.vmem [#allocation3], %s1870_s26 }
  0x45   : >> { %s319_s16 = sld [smem:[#allocation5 + %s318_s15]]  ;;  %s328_s17 = sadd.s32 1, %s318_s15 }
  0x46   : >> { %s329_s28 = sld [smem:[#allocation5 + %s328_s17]]  ;;  %s339_s18 = sadd.s32 2, %s318_s15 }
  0x47   : >> { %s340_s19 = sld [smem:[#allocation5 + %s339_s18]]  ;;  %s350_s8 = sadd.s32 3, %s318_s15 }
  0x48   : >> { %s351_s20 = sld [smem:[#allocation5 + %s350_s8]]  ;;  %s316_s26 = sadd.s32 1, %s1870_s26  }
  0x49   : >> { %p313_p1 = scmp.ge.s32.totalorder %s316_s26, 8  }
  0x4a   : > { %v1320_v9 = vld [vmem:[#allocation9 + $0xe0] sm:$0xf] (%p313_p1)  ;;  %v1505_v10 = vld [vmem:[#allocation9 + $0xec] sm:$0xf0] (%p313_p1)  ;;  %v1503_v11 = vld [vmem:[#allocation9 + $0xe4] sm:$0xf] (%p313_p1) }
  0x4b   : >> { %s320_s21 = scalar_lea.vmem [#allocation13], %s319_s16  ;;  %s324_s23 = scalar_lea.vmem [#allocation12], %s319_s16  ;;  %v1321_v12 = vor.u32 (%p313_p1), %v1505_v10, %v1320_v9  ;;  %v1322_v13 = vld [vmem:[#allocation9 + $0xf0] sm:$0xf0] (%p313_p1)  ;;  %v1328_v14 = vld [vmem:[#allocation9 + $0xe8] sm:$0xf] (%p313_p1) }
  0x4c   : >> { %v321_v1 = vld [vmem:[%s320_s21] sm:$0x1]  ;;  %s331_s0 = scalar_lea.vmem [#allocation13], %s329_s28  ;;  %s335_s27 = scalar_lea.vmem [#allocation12], %s329_s28  ;;  %v1506_v15 = vld [vmem:[#allocation9 + $0xf4] sm:$0xf0] (%p313_p1)  ;;  %v1325_v16 = vor.u32 (%p313_p1), %v1503_v11, %v1322_v13 }
  0x4d   : >> { %v325_v2 = vld [vmem:[%s324_s23] sm:$0x1]  ;;  %323 = vst [vmem:[%s322_s24] sm:$0x1] %v321_v1  ;;  %s342_s14 = scalar_lea.vmem [#allocation13], %s340_s19  ;;  %s346_s17 = scalar_lea.vmem [#allocation12], %s340_s19  ;;  %v1329_v17 = vor.u32 (%p313_p1), %v1506_v15, %v1328_v14  ;;  %555 = vmatpush.bf16.msra.mxu0 (%p313_p1), %v1321_v12 }
  0x4e   : >> { %v332_v3 = vld [vmem:[%s331_s0] sm:$0x1]  ;;  %327 = vst [vmem:[%s326_s10] sm:$0x1] %v325_v2  ;;  %s353_s15 = scalar_lea.vmem [#allocation13], %s351_s20  ;;  %s357_s18 = scalar_lea.vmem [#allocation12], %s351_s20  ;;  %568 = vmatpush.bf16.msra.mxu1 (%p313_p1), %v1325_v16 }
  0x4f   : >> { %v336_v4 = vld [vmem:[%s335_s27] sm:$0x1]  ;;  %1200 = vst [vmem:[%s322_s24 + $0x8] sm:$0x1] %v332_v3  ;;  %v1504_v18 = vld [vmem:[#allocation9 + $0xec] sm:$0xf] (%p313_p1)  ;;  %581 = vmatpush.bf16.msra.mxu2 (%p313_p1), %v1329_v17 }
  0x50   : >> { %v343_v5 = vld [vmem:[%s342_s14] sm:$0x1]  ;;  %1201 = vst [vmem:[%s326_s10 + $0x8] sm:$0x1] %v336_v4  ;;  %315 = sbr.rel (!%p313_p1) target bundleno = 67 (0x43), region = 122  ;;  %s1468_s16 = sshll.u32 (%p313_p1), %s1949_s11, 3 }
  0x51   : >> { %v347_v6 = vld [vmem:[%s346_s17] sm:$0x1]  ;;  %1202 = vst [vmem:[%s322_s24 + $0x10] sm:$0x1] %v343_v5  ;;  %v1330_v19 = vld [vmem:[#allocation9 + $0xf8] sm:$0xf0] (%p313_p1) }
  0x52   : >> { %v354_v7 = vld [vmem:[%s353_s15] sm:$0x1]  ;;  %1203 = vst [vmem:[%s326_s10 + $0x10] sm:$0x1] %v347_v6  ;;  %v1304_v20 = vld [vmem:[#allocation9 + $0xc0] sm:$0xf] (%p313_p1)  ;;  %v1333_v21 = vor.u32 (%p313_p1), %v1504_v18, %v1330_v19 }
  0x53   : >> { %v358_v8 = vld [vmem:[%s357_s18] sm:$0x1]  ;;  %1204 = vst [vmem:[%s322_s24 + $0x18] sm:$0x1] %v354_v7  ;;  %v1501_v22 = vld [vmem:[#allocation9 + $0xcc] sm:$0xf0] (%p313_p1) }
  0x54   : >> { %1205 = vst [vmem:[%s326_s10 + $0x18] sm:$0x1] %v358_v8  ;;  %v1499_v23 = vld [vmem:[#allocation9 + $0xc4] sm:$0xf] (%p313_p1)  ;;  %v1306_v24 = vld [vmem:[#allocation9 + $0xd0] sm:$0xf0] (%p313_p1)  ;;  %v1305_v25 = vor.u32 (%p313_p1), %v1501_v22, %v1304_v20  ;;  %594 = vmatpush.bf16.msra.mxu3 (%p313_p1), %v1333_v21 }
  0x55   : > { %v1309_v26 = vor.u32 %v1499_v23, %v1306_v24  ;;  %v1312_v27 = vld [vmem:[#allocation9 + $0xc8] sm:$0xf]  ;;  %v1502_v28 = vld [vmem:[#allocation9 + $0xd4] sm:$0xf0]  ;;  %v1500_v29 = vld [vmem:[#allocation9 + $0xcc] sm:$0xf] }
  0x56   : > { %v1313_v30 = vor.u32 %v1502_v28, %v1312_v27  ;;  %v1314_v31 = vld [vmem:[#allocation9 + $0xd8] sm:$0xf0]  ;;  %v1288_v32 = vld [vmem:[#allocation9 + $0xa0] sm:$0xf]  ;;  %v1497_v33 = vld [vmem:[#allocation9 + $0xac] sm:$0xf0]  ;;  %556 = vmatpush.bf16.msra.mxu0 %v1305_v25 }
  0x57   : > { %v1317_v34 = vor.u32 %v1500_v29, %v1314_v31  ;;  %v1495_v35 = vld [vmem:[#allocation9 + $0xa4] sm:$0xf]  ;;  %v1290_v36 = vld [vmem:[#allocation9 + $0xb0] sm:$0xf0]  ;;  %v1296_v37 = vld [vmem:[#allocation9 + $0xa8] sm:$0xf]  ;;  %v1289_v38 = vor.u32 %v1497_v33, %v1288_v32  ;;  %569 = vmatpush.bf16.msra.mxu1 %v1309_v26 }
  0x58   : > { %v1498_v39 = vld [vmem:[#allocation9 + $0xb4] sm:$0xf0]  ;;  %v1496_v40 = vld [vmem:[#allocation9 + $0xac] sm:$0xf]  ;;  %v1298_v41 = vld [vmem:[#allocation9 + $0xb8] sm:$0xf0]  ;;  %582 = vmatpush.bf16.msra.mxu2 %v1313_v30  ;;  %v1293_v42 = vor.u32 %v1495_v35, %v1290_v36 }
  0x59   : > { %v1297_v43 = vor.u32 %v1498_v39, %v1296_v37  ;;  %v1272_v44 = vld [vmem:[#allocation9 + $0x80] sm:$0xf]  ;;  %v1493_v45 = vld [vmem:[#allocation9 + $0x8c] sm:$0xf0]  ;;  %v1491_v46 = vld [vmem:[#allocation9 + $0x84] sm:$0xf]  ;;  %595 = vmatpush.bf16.msra.mxu3 %v1317_v34  ;;  %v1301_v47 = vor.u32 %v1496_v40, %v1298_v41 }
  0x5a   : > { %v1274_v48 = vld [vmem:[#allocation9 + $0x90] sm:$0xf0]  ;;  %v1280_v49 = vld [vmem:[#allocation9 + $0x88] sm:$0xf]  ;;  %v1494_v50 = vld [vmem:[#allocation9 + $0x94] sm:$0xf0]  ;;  %557 = vmatpush.bf16.msra.mxu0 %v1289_v38  ;;  %v1273_v53 = vor.u32 %v1493_v45, %v1272_v44 }
  0x5b   : > { %v1492_v51 = vld [vmem:[#allocation9 + $0x8c] sm:$0xf]  ;;  %v1282_v52 = vld [vmem:[#allocation9 + $0x98] sm:$0xf0]  ;;  %570 = vmatpush.bf16.msra.mxu1 %v1293_v42  ;;  %v1277_v54 = vor.u32 %v1491_v46, %v1274_v48  ;;  %v1281_v55 = vor.u32 %v1494_v50, %v1280_v49  ;;  %v1256_v56 = vld [vmem:[#allocation9 + $0x60] sm:$0xf] }
  0x5c   : > { %583 = vmatpush.bf16.msra.mxu2 %v1297_v43  ;;  %v1489_v57 = vld [vmem:[#allocation9 + $0x6c] sm:$0xf0]  ;;  %v1487_v58 = vld [vmem:[#allocation9 + $0x64] sm:$0xf]  ;;  %v1285_v59 = vor.u32 %v1492_v51, %v1282_v52  ;;  %v1258_v60 = vld [vmem:[#allocation9 + $0x70] sm:$0xf0] }
  0x5d   : > { %596 = vmatpush.bf16.msra.mxu3 %v1301_v47  ;;  %v1264_v61 = vld [vmem:[#allocation9 + $0x68] sm:$0xf]  ;;  %v1490_v62 = vld [vmem:[#allocation9 + $0x74] sm:$0xf0]  ;;  %v1488_v63 = vld [vmem:[#allocation9 + $0x6c] sm:$0xf]  ;;  %v1257_v1 = vor.u32 %v1489_v57, %v1256_v56  ;;  %v1261_v2 = vor.u32 %v1487_v58, %v1258_v60 }
  0x5e   : > { %v1266_v0 = vld [vmem:[#allocation9 + $0x78] sm:$0xf0]  ;;  %558 = vmatpush.bf16.msra.mxu0 %v1273_v53  ;;  %v1265_v3 = vor.u32 %v1490_v62, %v1264_v61  ;;  %v1240_v4 = vld [vmem:[#allocation9 + $0x40] sm:$0xf]  ;;  %v1485_v5 = vld [vmem:[#allocation9 + $0x4c] sm:$0xf0] }
  0x5f   : > { %571 = vmatpush.bf16.msra.mxu1 %v1277_v54  ;;  %v1483_v6 = vld [vmem:[#allocation9 + $0x44] sm:$0xf]  ;;  %v1269_v7 = vor.u32 %v1488_v63, %v1266_v0  ;;  %v1242_v8 = vld [vmem:[#allocation9 + $0x50] sm:$0xf0]  ;;  %v1248_v9 = vld [vmem:[#allocation9 + $0x48] sm:$0xf]  ;;  %v1241_v13 = vor.u32 %v1485_v5, %v1240_v4 }
  0x60   : > { %584 = vmatpush.bf16.msra.mxu2 %v1281_v55  ;;  %v1486_v10 = vld [vmem:[#allocation9 + $0x54] sm:$0xf0]  ;;  %v1484_v11 = vld [vmem:[#allocation9 + $0x4c] sm:$0xf]  ;;  %v1250_v12 = vld [vmem:[#allocation9 + $0x58] sm:$0xf0]  ;;  %v1245_v14 = vor.u32 %v1483_v6, %v1242_v8 }
  0x61   : > { %597 = vmatpush.bf16.msra.mxu3 %v1285_v59  ;;  %v1249_v15 = vor.u32 %v1486_v10, %v1248_v9  ;;  %v1224_v16 = vld [vmem:[#allocation9 + $0x20] sm:$0xf]  ;;  %v1481_v17 = vld [vmem:[#allocation9 + $0x2c] sm:$0xf0]  ;;  %v1479_v18 = vld [vmem:[#allocation9 + $0x24] sm:$0xf]  ;;  %v1253_v19 = vor.u32 %v1484_v11, %v1250_v12 }
  0x62   : > { %559 = vmatpush.bf16.msra.mxu0 %v1257_v1  ;;  %v1226_v20 = vld [vmem:[#allocation9 + $0x30] sm:$0xf0]  ;;  %v1232_v21 = vld [vmem:[#allocation9 + $0x28] sm:$0xf]  ;;  %v1482_v22 = vld [vmem:[#allocation9 + $0x34] sm:$0xf0]  ;;  %v1225_v25 = vor.u32 %v1481_v17, %v1224_v16 }
  0x63   : > { %572 = vmatpush.bf16.msra.mxu1 %v1261_v2  ;;  %v1480_v23 = vld [vmem:[#allocation9 + $0x2c] sm:$0xf]  ;;  %v1234_v24 = vld [vmem:[#allocation9 + $0x38] sm:$0xf0]  ;;  %v1208_v26 = vld [vmem:[#allocation9] sm:$0xf]  ;;  %v1229_v29 = vor.u32 %v1479_v18, %v1226_v20  ;;  %v1233_v30 = vor.u32 %v1482_v22, %v1232_v21 }
  0x64   : > { %585 = vmatpush.bf16.msra.mxu2 %v1265_v3  ;;  %v1477_v27 = vld [vmem:[#allocation9 + $0xc] sm:$0xf0]  ;;  %v1475_v28 = vld [vmem:[#allocation9 + $0x4] sm:$0xf]  ;;  %v1210_v31 = vld [vmem:[#allocation9 + $0x10] sm:$0xf0]  ;;  %v1237_v34 = vor.u32 %v1480_v23, %v1234_v24 }
  0x65   : > { %598 = vmatpush.bf16.msra.mxu3 %v1269_v7  ;;  %v1216_v32 = vld [vmem:[#allocation9 + $0x8] sm:$0xf]  ;;  %v1478_v33 = vld [vmem:[#allocation9 + $0x14] sm:$0xf0]  ;;  %v1476_v35 = vld [vmem:[#allocation9 + $0xc] sm:$0xf]  ;;  %v1209_v40 = vor.u32 %v1477_v27, %v1208_v26  ;;  %v1213_v44 = vor.u32 %v1475_v28, %v1210_v31 }
  0x66   : > { %560 = vmatpush.bf16.msra.mxu0 %v1241_v13  ;;  %v1218_v36 = vld [vmem:[#allocation9 + $0x18] sm:$0xf0]  ;;  %v1448_v37 = vld [vmem:[#allocation11 + $0xe0] sm:$0xf]  ;;  %v1537_v38 = vld [vmem:[#allocation11 + $0xec] sm:$0xf0]  ;;  %v1217_v45 = vor.u32 %v1478_v33, %v1216_v32 }
  0x67   : > { %573 = vmatpush.bf16.msra.mxu1 %v1245_v14  ;;  %v1535_v39 = vld [vmem:[#allocation11 + $0xe4] sm:$0xf]  ;;  %v1450_v41 = vld [vmem:[#allocation11 + $0xf0] sm:$0xf0]  ;;  %v1456_v42 = vld [vmem:[#allocation11 + $0xe8] sm:$0xf]  ;;  %v1221_v48 = vor.u32 %v1476_v35, %v1218_v36  ;;  %v1449_v49 = vor.u32 %v1537_v38, %v1448_v37 }
  0x68   : > { %586 = vmatpush.bf16.msra.mxu2 %v1249_v15  ;;  %v1538_v43 = vld [vmem:[#allocation11 + $0xf4] sm:$0xf0]  ;;  %v1536_v46 = vld [vmem:[#allocation11 + $0xec] sm:$0xf]  ;;  %v1458_v47 = vld [vmem:[#allocation11 + $0xf8] sm:$0xf0]  ;;  %v1453_v51 = vor.u32 %v1535_v39, %v1450_v41 }
  0x69   : > { %599 = vmatpush.bf16.msra.mxu3 %v1253_v19  ;;  %v361_v50 = vld [vmem:[%s263_s13] sm:$0xff]  ;;  %v1457_v52 = vor.u32 %v1538_v43, %v1456_v42  ;;  %v1432_v53 = vld [vmem:[#allocation11 + $0xc0] sm:$0xf]  ;;  %v1531_v55 = vld [vmem:[#allocation11 + $0xc4] sm:$0xf]  ;;  %v1461_v56 = vor.u32 %v1536_v46, %v1458_v47  ;;  %s1878_s28 = smov [#allocation12]  }
  0x6a   : > { %561 = vmatpush.bf16.msra.mxu0 %v1225_v25  ;;  %v1533_v54 = vld [vmem:[#allocation11 + $0xcc] sm:$0xf0]  ;;  %v1434_v57 = vld [vmem:[#allocation11 + $0xd0] sm:$0xf0]  ;;  %v1440_v58 = vld [vmem:[#allocation11 + $0xc8] sm:$0xf]  ;;  %v362_v62 = vpack.c.bf16 %v361_v50, %v361_v50 }
  0x6b   : > { %574 = vmatpush.bf16.msra.mxu1 %v1229_v29  ;;  %v1534_v59 = vld [vmem:[#allocation11 + $0xd4] sm:$0xf0]  ;;  %v1532_v60 = vld [vmem:[#allocation11 + $0xcc] sm:$0xf]  ;;  %v1442_v61 = vld [vmem:[#allocation11 + $0xd8] sm:$0xf0]  ;;  %v1433_v63 = vor.u32 %v1533_v54, %v1432_v53  ;;  %v1437_v0 = vor.u32 %v1531_v55, %v1434_v57 }
  0x6c   : > { %587 = vmatpush.bf16.msra.mxu2 %v1233_v30  ;;  %v1441_v1 = vor.u32 %v1534_v59, %v1440_v58  ;;  %v1416_v2 = vld [vmem:[#allocation11 + $0xa0] sm:$0xf]  ;;  %v1529_v3 = vld [vmem:[#allocation11 + $0xac] sm:$0xf0]  ;;  %v1527_v4 = vld [vmem:[#allocation11 + $0xa4] sm:$0xf]  ;;  %v1445_v5 = vor.u32 %v1532_v60, %v1442_v61 }
  0x6d   : > { %600 = vmatpush.bf16.msra.mxu3 %v1237_v34  ;;  %v1418_v6 = vld [vmem:[#allocation11 + $0xb0] sm:$0xf0]  ;;  %v1424_v7 = vld [vmem:[#allocation11 + $0xa8] sm:$0xf]  ;;  %v1530_v8 = vld [vmem:[#allocation11 + $0xb4] sm:$0xf0]  ;;  %v1417_v11 = vor.u32 %v1529_v3, %v1416_v2 }
  0x6e   : > { %562 = vmatpush.bf16.msra.mxu0 %v1209_v40  ;;  %v1528_v9 = vld [vmem:[#allocation11 + $0xac] sm:$0xf]  ;;  %v1426_v10 = vld [vmem:[#allocation11 + $0xb8] sm:$0xf0]  ;;  %v1421_v12 = vor.u32 %v1527_v4, %v1418_v6  ;;  %v1425_v13 = vor.u32 %v1530_v8, %v1424_v7  ;;  %v1400_v14 = vld [vmem:[#allocation11 + $0x80] sm:$0xf] }
  0x6f   : > { %575 = vmatpush.bf16.msra.mxu1 %v1213_v44  ;;  %v1525_v15 = vld [vmem:[#allocation11 + $0x8c] sm:$0xf0]  ;;  %v1523_v16 = vld [vmem:[#allocation11 + $0x84] sm:$0xf]  ;;  %v1429_v17 = vor.u32 %v1528_v9, %v1426_v10  ;;  %v1402_v18 = vld [vmem:[#allocation11 + $0x90] sm:$0xf0] }
  0x70   : > { %588 = vmatpush.bf16.msra.mxu2 %v1217_v45  ;;  %v1408_v19 = vld [vmem:[#allocation11 + $0x88] sm:$0xf]  ;;  %v1526_v20 = vld [vmem:[#allocation11 + $0x94] sm:$0xf0]  ;;  %v1524_v21 = vld [vmem:[#allocation11 + $0x8c] sm:$0xf]  ;;  %v1401_v23 = vor.u32 %v1525_v15, %v1400_v14  ;;  %v1405_v24 = vor.u32 %v1523_v16, %v1402_v18 }
  0x71   : > { %601 = vmatpush.bf16.msra.mxu3 %v1221_v48  ;;  %563 = vmatmul.bf16.vlgmr.msra.gmra.mxu0 %v362_v62  ;;  %v1410_v22 = vld [vmem:[#allocation11 + $0x98] sm:$0xf0]  ;;  %v1409_v25 = vor.u32 %v1526_v20, %v1408_v19  ;;  %v1384_v26 = vld [vmem:[#allocation11 + $0x60] sm:$0xf]  ;;  %v1521_v27 = vld [vmem:[#allocation11 + $0x6c] sm:$0xf0] }
  0x72   : > { %805 = vmatpush.bf16.msrb.mxu0 %v1449_v49  ;;  %576 = vmatmul.bf16.vlgmr.msra.gmra.mxu1 %v362_v62  ;;  %v1519_v28 = vld [vmem:[#allocation11 + $0x64] sm:$0xf]  ;;  %v1413_v29 = vor.u32 %v1524_v21, %v1410_v22  ;;  %v1386_v30 = vld [vmem:[#allocation11 + $0x70] sm:$0xf0]  ;;  %v1392_v31 = vld [vmem:[#allocation11 + $0x68] sm:$0xf]  ;;  %v1385_v35 = vor.u32 %v1521_v27, %v1384_v26 }
  0x73   : > { %824 = vmatpush.bf16.msrb.mxu1 %v1453_v51  ;;  %589 = vmatmul.bf16.vlgmr.msra.gmra.mxu2 %v362_v62  ;;  %v1522_v32 = vld [vmem:[#allocation11 + $0x74] sm:$0xf0]  ;;  %v1520_v33 = vld [vmem:[#allocation11 + $0x6c] sm:$0xf]  ;;  %v1394_v34 = vld [vmem:[#allocation11 + $0x78] sm:$0xf0]  ;;  %v1389_v36 = vor.u32 %v1519_v28, %v1386_v30 }
  0x74   : > { %843 = vmatpush.bf16.msrb.mxu2 %v1457_v52  ;;  %602 = vmatmul.bf16.vlgmr.msra.gmra.mxu3 %v362_v62  ;;  %v1393_v37 = vor.u32 %v1522_v32, %v1392_v31  ;;  %v1368_v38 = vld [vmem:[#allocation11 + $0x40] sm:$0xf]  ;;  %v1517_v39 = vld [vmem:[#allocation11 + $0x4c] sm:$0xf0]  ;;  %v1515_v40 = vld [vmem:[#allocation11 + $0x44] sm:$0xf]  ;;  %v1397_v41 = vor.u32 %v1520_v33, %v1394_v34 }
  0x75   : > { %862 = vmatpush.bf16.msrb.mxu3 %v1461_v56  ;;  %v1370_v42 = vld [vmem:[#allocation11 + $0x50] sm:$0xf0]  ;;  %v1376_v43 = vld [vmem:[#allocation11 + $0x48] sm:$0xf]  ;;  %v1518_v44 = vld [vmem:[#allocation11 + $0x54] sm:$0xf0]  ;;  %v1369_v47 = vor.u32 %v1517_v39, %v1368_v38 }
  0x76   : > { %806 = vmatpush.bf16.msrb.mxu0 %v1433_v63  ;;  %v1516_v45 = vld [vmem:[#allocation11 + $0x4c] sm:$0xf]  ;;  %v1378_v46 = vld [vmem:[#allocation11 + $0x58] sm:$0xf0]  ;;  %v1373_v48 = vor.u32 %v1515_v40, %v1370_v42  ;;  %v1377_v49 = vor.u32 %v1518_v44, %v1376_v43  ;;  %v1352_v50 = vld [vmem:[#allocation11 + $0x20] sm:$0xf] }
  0x77   : > { %825 = vmatpush.bf16.msrb.mxu1 %v1437_v0  ;;  %v1513_v51 = vld [vmem:[#allocation11 + $0x2c] sm:$0xf0]  ;;  %v1511_v52 = vld [vmem:[#allocation11 + $0x24] sm:$0xf]  ;;  %v1381_v53 = vor.u32 %v1516_v45, %v1378_v46  ;;  %v1354_v54 = vld [vmem:[#allocation11 + $0x30] sm:$0xf0] }
  0x78   : > { %844 = vmatpush.bf16.msrb.mxu2 %v1441_v1  ;;  %v1360_v55 = vld [vmem:[#allocation11 + $0x28] sm:$0xf]  ;;  %v1514_v56 = vld [vmem:[#allocation11 + $0x34] sm:$0xf0]  ;;  %v1512_v57 = vld [vmem:[#allocation11 + $0x2c] sm:$0xf]  ;;  %v1353_v59 = vor.u32 %v1513_v51, %v1352_v50  ;;  %v1357_v60 = vor.u32 %v1511_v52, %v1354_v54 }
  0x79   : > { %863 = vmatpush.bf16.msrb.mxu3 %v1445_v5  ;;  %v1362_v58 = vld [vmem:[#allocation11 + $0x38] sm:$0xf0]  ;;  %v1361_v61 = vor.u32 %v1514_v56, %v1360_v55  ;;  %v1336_v62 = vld [vmem:[#allocation11] sm:$0xf]  ;;  %v1509_v63 = vld [vmem:[#allocation11 + $0xc] sm:$0xf0] }
  0x7a   : > { %807 = vmatpush.bf16.msrb.mxu0 %v1417_v11  ;;  %v1507_v0 = vld [vmem:[#allocation11 + $0x4] sm:$0xf]  ;;  %v1365_v1 = vor.u32 %v1512_v57, %v1362_v58  ;;  %v1338_v2 = vld [vmem:[#allocation11 + $0x10] sm:$0xf0]  ;;  %v1344_v3 = vld [vmem:[#allocation11 + $0x8] sm:$0xf]  ;;  %v1337_v7 = vor.u32 %v1509_v63, %v1336_v62 }
  0x7b   : > { %826 = vmatpush.bf16.msrb.mxu1 %v1421_v12  ;;  %v1510_v4 = vld [vmem:[#allocation11 + $0x14] sm:$0xf0]  ;;  %v1508_v5 = vld [vmem:[#allocation11 + $0xc] sm:$0xf]  ;;  %v1346_v6 = vld [vmem:[#allocation11 + $0x18] sm:$0xf0]  ;;  %v1341_v10 = vor.u32 %v1507_v0, %v1338_v2 }
  0x7c   : > { %845 = vmatpush.bf16.msrb.mxu2 %v1425_v13  ;;  %v607_v8 = vld [vmem:[#allocation2] sm:$0xff]  ;;  %v608_v9 = vld [vmem:[#allocation2 + $0x8] sm:$0xff]  ;;  %v1345_v11 = vor.u32 %v1510_v4, %v1344_v3  ;;  %v1349_v12 = vor.u32 %v1508_v5, %v1346_v6  ;;  %v609_v14 = vld [vmem:[#allocation2 + $0x10] sm:$0xff]  ;;  %s1054_s19 = sshll.u32 %s1878_s28, 4  ;;  %s1056_s21 = sshll.u32 %s2184_s6, 4  ;;  %s1055_s19 = int_to_ptr.vmem [resolvable:$true] %s1054_s19  ;;  %s1057_s21 = int_to_ptr.hbm [resolvable:$true] %s1056_s21 }
  0x7d   : > { %864 = vmatpush.bf16.msrb.mxu3 %v1429_v17  ;;  %v611_v13 = vpack.c.bf16 %v608_v9, %v607_v8  ;;  %v610_v15 = vld [vmem:[#allocation2 + $0x18] sm:$0xff]  ;;  %p1573_p3 = scmp.eq.s32.totalorder %s1949_s11, 2  ;;  %s1045_s23 = scalar_lea.vmem [#allocation12], %s1468_s16 }
  0x7e   : > { %808 = vmatpush.bf16.msrb.mxu0 %v1401_v23  ;;  %v612_v16 = vpack.c.bf16 %v610_v15, %v609_v14  ;;  %v1627_v27 = vld [vmem:[%s2183_s5] ss:$0 sm:$0xff]  ;;  %s1879_s24 = smov 128   ;;  %s1880_s0 = smov 8  }
  0x7f   : > { %827 = vmatpush.bf16.msrb.mxu1 %v1405_v24  ;;  %v881_v31 = vld [vmem:[%s2182_s4] sm:$0x7]  ;;  %s1881_s27 = smov [#allocation13]   ;;  %s1070_s15 = sshll.u32 %s2185_s7, 4  ;;  %s1071_s15 = int_to_ptr.hbm [resolvable:$true] %s1070_s15 }
  0x80   : > { %846 = vmatpush.bf16.msrb.mxu2 %v1409_v25  ;;  %v884_v34 = vperm.slane %v881_v31, 1  ;;  %v885_v3 = vperm.slane %v881_v31, 2  ;;  %s1068_s10 = sshll.u32 %s1881_s27, 4  ;;  %s1047_s18 = scalar_lea.vmem [#allocation13], %s1468_s16  ;;  %s1069_s10 = int_to_ptr.vmem [resolvable:$true] %s1068_s10 }
  0x81   : > { %865 = vmatpush.bf16.msrb.mxu3 %v1413_v29 }
  0x82   : > { %809 = vmatpush.bf16.msrb.mxu0 %v1385_v35 }
  0x83   : > { %828 = vmatpush.bf16.msrb.mxu1 %v1389_v36  ;;  %v883_v36 = vperm.slane %v881_v31, 0 }
  0x84   : > { %847 = vmatpush.bf16.msrb.mxu2 %v1393_v37 }
  0x85   : > { %866 = vmatpush.bf16.msrb.mxu3 %v1397_v41 }
  0x86   : > { %810 = vmatpush.bf16.msrb.mxu0 %v1369_v47 }
  0x87   : > { %829 = vmatpush.bf16.msrb.mxu1 %v1373_v48 }
  0x88   : > { %848 = vmatpush.bf16.msrb.mxu2 %v1377_v49 }
  0x89   : > { %867 = vmatpush.bf16.msrb.mxu3 %v1381_v53 }
  0x8a   : > { %811 = vmatpush.bf16.msrb.mxu0 %v1353_v59 }
  0x8b   : > { %830 = vmatpush.bf16.msrb.mxu1 %v1357_v60 }
  0x8c   : > { %849 = vmatpush.bf16.msrb.mxu2 %v1361_v61 }
  0x8d   : > { %868 = vmatpush.bf16.msrb.mxu3 %v1365_v1 }
  0x8e   : > { %812 = vmatpush.bf16.msrb.mxu0 %v1337_v7 }
  0x8f   : > { %831 = vmatpush.bf16.msrb.mxu1 %v1341_v10 }
  0x90   : > { %850 = vmatpush.bf16.msrb.mxu2 %v1345_v11 }
  0x91   : > { %869 = vmatpush.bf16.msrb.mxu3 %v1349_v12  ;;  %813 = vmatmul.bf16.vlgmr.msrb.gmra.mxu0 %v611_v13 }
  0x92   : > { %832 = vmatmul.bf16.vlgmr.msrb.gmra.mxu1 %v611_v13 }
  0x93   : > { %851 = vmatmul.bf16.vlgmr.msrb.gmra.mxu2 %v611_v13 }
  0x94   : > { %870 = vmatmul.bf16.vlgmr.msrb.gmra.mxu3 %v611_v13 }
  0xa1   : > { %818 = vmatmul.bf16.gmra.mxu0 %v612_v16 }
  0xa2   : > { %837 = vmatmul.bf16.gmra.mxu1 %v612_v16 }
  0xa3   : > { %856 = vmatmul.bf16.gmra.mxu2 %v612_v16 }
  0xa4   : > { %875 = vmatmul.bf16.gmra.mxu3 %v612_v16 }
  0xee   : > { %v564_v17 = vpop.f32.mrf.mxu0 }
  0xef   : > { %v577_v18 = vpop.f32.mrf.mxu1  ;;  %v889_v40 = vadd.f32 %v883_v36, %v564_v17 }
  0xf0   : > { %v890_v37 = vadd.f32 %v884_v34, %v577_v18 }
  0xf6   : > { %v590_v20 = vpop.f32.mrf.mxu2  ;;  %v566_v21 = vpop.f32.mrf.mxu0 }
  0xf7   : > { %v603_v19 = vpop.f32.mrf.mxu3  ;;  %v579_v22 = vpop.f32.mrf.mxu1  ;;  %v891_v11 = vadd.f32 %v885_v3, %v590_v20 }
  0xf8   : > { %v947_v28 = vadd.f32 %v1627_v27, %v603_v19 }
  0xfe   : > { %v592_v24 = vpop.f32.mrf.mxu2 }
  0xff   : > { %v605_v23 = vpop.f32.mrf.mxu3 }
 0x10e   : > { %v814_v25 = vpop.f32.mrf.mxu0 }
 0x10f   : > { %v833_v26 = vpop.f32.mrf.mxu1  ;;  %v892_v45 = vadd.f32 %v889_v40, %v814_v25 }
 0x110   : > { %v893_v43 = vadd.f32 %v890_v37, %v833_v26 }
 0x116   : > { %v816_v30 = vpop.f32.mrf.mxu0  ;;  %v852_v47 = vpop.f32.mrf.mxu2 }
 0x117   : > { %v871_v29 = vpop.f32.mrf.mxu3  ;;  %v835_v33 = vpop.f32.mrf.mxu1  ;;  %v895_v49 = vadd.f32 %v892_v45, %v816_v30  ;;  %v894_v18 = vadd.f32 %v891_v11, %v852_v47 }
 0x118   : > { %v948_v32 = vadd.f32 %v947_v28, %v871_v29  ;;  %v896_v50 = vadd.f32 %v893_v43, %v835_v33 }
 0x11a   : > { %v1464_v35 = vmul.f32 -1.442695, %v948_v32 }
 0x11c   : > { %1628 = vpow2.f32 %v1464_v35 }
 0x11e   : > { %v819_v39 = vpop.f32.mrf.mxu0  ;;  %v854_v63 = vpop.f32.mrf.mxu2 }
 0x11f   : > { %v873_v38 = vpop.f32.mrf.mxu3  ;;  %v838_v42 = vpop.f32.mrf.mxu1  ;;  %v898_v51 = vadd.f32 %v895_v49, %v819_v39  ;;  %v897_v26 = vadd.f32 %v894_v18, %v854_v63  ;;  %v968_v63 = vld [vmem:[#allocation3] sm:$0xff] }
 0x120   : > { %v971_v41 = vadd.f32 %v947_v28, %v873_v38  ;;  %v899_v52 = vadd.f32 %v896_v50, %v838_v42 }
 0x122   : > { %v1629_v44 = vpop.eup %1628  ;;  %v1465_v46 = vmul.f32 -1.442695, %v971_v41 }
 0x123   : > { %v2044_v48 = vadd.f32 1.0, %v1629_v44 }
 0x124   : > { %1630 = vpow2.f32 %v1465_v46 }
 0x125   : > { %1632 = vrcp.f32 %v2044_v48  ;;  %v964_v25 = vand.u32 2147483648, %v2044_v48  ;;  %vm958_vm0 = vweird.f32 %v2044_v48  ;;  %v962_v32 = vand.u32 2147483647, %v2044_v48 }
 0x126   : > { %v821_v54 = vpop.f32.mrf.mxu0  ;;  %v857_v17 = vpop.f32.mrf.mxu2 }
 0x127   : > { %v876_v53 = vpop.f32.mrf.mxu3  ;;  %v901_v56 = vadd.f32 %v898_v51, %v821_v54  ;;  %v840_v57 = vpop.f32.mrf.mxu1  ;;  %v965_v37 = vor.u32 1.1754944e-38, %v964_v25  ;;  %v900_v46 = vadd.f32 %v897_v26, %v857_v17  ;;  %vm963_vm8 = vcmp.eq.f32.partialorder %v962_v32, 8.507059e+37 }
 0x128   : > { %v994_v55 = vadd.f32 %v947_v28, %v876_v53  ;;  %v902_v58 = vadd.f32 %v899_v52, %v840_v57 }
 0x129   : > { %v1462_v61 = vmul.f32 -1.442695, %v901_v56 }
 0x12a   : > { %v1631_v59 = vpop.eup %1630  ;;  %v1466_v60 = vmul.f32 -1.442695, %v994_v55  ;;  %v1463_v0 = vmul.f32 -1.442695, %v902_v58 }
 0x12b   : > { %v2047_v62 = vadd.f32 1.0, %v1631_v59  ;;  %v2050_v1 = vpop.eup %1632  ;;  %v991_v59 = vld [vmem:[#allocation3 + $0x8] sm:$0xff] }
 0x12c   : > { %1634 = vpow2.f32 %v1466_v60  ;;  %v954_v5 = vmul.f32 %v2050_v1, %v2044_v48  ;;  %vm959_vm1 = vweird.f32 %v2050_v1 }
 0x12d   : > { %1636 = vrcp.f32 %v2047_v62  ;;  %v985_v33 = vand.u32 2147483647, %v2047_v62  ;;  %v987_v34 = vand.u32 2147483648, %v2047_v62  ;;  %vm2086_vm3 = vmor %vm958_vm0, %vm959_vm1  ;;  %vm981_vm4 = vweird.f32 %v2047_v62 }
 0x12e   : > { %1638 = vpow2.f32 %v1462_v61  ;;  %v955_v13 = vsub.f32 1.0, %v954_v5  ;;  %v859_v44 = vpop.f32.mrf.mxu2 }
 0x12f   : > { %v878_v2 = vpop.f32.mrf.mxu3  ;;  %1640 = vpow2.f32 %v1463_v0  ;;  %vm986_vm9 = vcmp.eq.f32.partialorder %v985_v33, 8.507059e+37  ;;  %v988_v49 = vor.u32 1.1754944e-38, %v987_v34  ;;  %v903_v55 = vadd.f32 %v900_v46, %v859_v44 }
 0x130   : > { %v1017_v4 = vadd.f32 %v947_v28, %v878_v2  ;;  %v956_v19 = vmul.f32 %v2050_v1, %v955_v13 }
 0x132   : > { %v1635_v6 = vpop.eup %1634  ;;  %v1467_v7 = vmul.f32 -1.442695, %v1017_v4  ;;  %v957_v28 = vadd.f32 %v2050_v1, %v956_v19  ;;  %v1014_v4 = vld [vmem:[#allocation3 + $0x10] sm:$0xff] }
 0x133   : > { %v2054_v8 = vpop.eup %1636  ;;  %v2056_v9 = vadd.f32 1.0, %v1635_v6 }
 0x134   : > { %v1639_v10 = vpop.eup %1638  ;;  %v977_v12 = vmul.f32 %v2054_v8, %v2047_v62  ;;  %1642 = vpow2.f32 %v1467_v7  ;;  %vm982_vm2 = vweird.f32 %v2054_v8  ;;  %v961_v39 = vsel %vm2086_vm3, %v2050_v1, %v957_v28 }
 0x135   : > { %1644 = vrcp.f32 %v2056_v9  ;;  %v2061_v15 = vadd.f32 1.0, %v1639_v10  ;;  %v1641_v16 = vpop.eup %1640  ;;  %vm2094_vm6 = vmor %vm981_vm4, %vm982_vm2  ;;  %v1008_v41 = vand.u32 2147483647, %v2056_v9  ;;  %v1010_v42 = vand.u32 2147483648, %v2056_v9 }
 0x136   : > { %v978_v14 = vsub.f32 1.0, %v977_v12  ;;  %v2066_v22 = vadd.f32 1.0, %v1641_v16  ;;  %vm1004_vm7 = vweird.f32 %v2056_v9  ;;  %v966_v53 = vsel %vm963_vm8, %v965_v37, %v961_v39 }
 0x137   : > { %1646 = vrcp.f32 %v2061_v15  ;;  %vm1009_vm11 = vcmp.eq.f32.partialorder %v1008_v41, 8.507059e+37  ;;  %v1011_v58 = vor.u32 1.1754944e-38, %v1010_v42  ;;  %vm913_vm12 = vweird.f32 %v2061_v15 }
 0x138   : > { %v979_v20 = vmul.f32 %v2054_v8, %v978_v14  ;;  %v917_v61 = vand.u32 2147483647, %v2061_v15  ;;  %v919_v1 = vand.u32 2147483648, %v2061_v15 }
 0x13a   : > { %v1643_v21 = vpop.eup %1642  ;;  %v980_v30 = vadd.f32 %v2054_v8, %v979_v20  ;;  %v920_v14 = vor.u32 1.1754944e-38, %v919_v1  ;;  %vm918_vm2 = vcmp.eq.f32.partialorder %v917_v61, 8.507059e+37 }
 0x13b   : > { %v1645_v23 = vpop.eup %1644  ;;  %v2068_v24 = vadd.f32 1.0, %v1643_v21 }
 0x13c   : > { %v1000_v27 = vmul.f32 %v1645_v23, %v2056_v9  ;;  %vm1005_vm5 = vweird.f32 %v1645_v23  ;;  %v984_v45 = vsel %vm2094_vm6, %v2054_v8, %v980_v30  ;;  %v969_v9 = vmul.f32 %v968_v63, %v966_v53 }
 0x13d   : > { %1648 = vrcp.f32 %v2068_v24  ;;  %v2076_v29 = vpop.eup %1646  ;;  %vm2105_vm10 = vmor %vm1004_vm7, %vm1005_vm5  ;;  %v989_v57 = vsel %vm986_vm9, %v988_v49, %v984_v45  ;;  %v1033_v2 = vand.u32 2147483648, %v2068_v24  ;;  %v1031_v6 = vand.u32 2147483647, %v2068_v24 }
 0x13e   : > { %v1001_v31 = vsub.f32 1.0, %v1000_v27  ;;  %1650 = vrcp.f32 %v2066_v22  ;;  %v909_v35 = vmul.f32 %v2076_v29, %v2061_v15  ;;  %vm914_vm13 = vweird.f32 %v2076_v29  ;;  %v1037_v15 = vld [vmem:[#allocation3 + $0x18] sm:$0xff] }
 0x13f   : > { %v992_v7 = vmul.f32 %v991_v59, %v989_v57  ;;  %vm2126_vm15 = vmor %vm913_vm12, %vm914_vm13  ;;  %1652 = vtanh.f32 %v903_v55  ;;  %vm1027_vm0 = vweird.f32 %v2068_v24  ;;  %v1034_v16 = vor.u32 1.1754944e-38, %v1033_v2 }
 0x140   : > { %v1002_v38 = vmul.f32 %v1645_v23, %v1001_v31  ;;  %v910_v43 = vsub.f32 1.0, %v909_v35  ;;  %vm1032_vm3 = vcmp.eq.f32.partialorder %v1031_v6, 8.507059e+37  ;;  %v938_v30 = vand.u32 2147483648, %v2066_v22 }
 0x141   : > { %v993_v17 = vadd.f32 %v992_v7, %v969_v9  ;;  %vm932_vm5 = vweird.f32 %v2066_v22  ;;  %v936_v31 = vand.u32 2147483647, %v2066_v22 }
 0x142   : > { %v1003_v47 = vadd.f32 %v1645_v23, %v1002_v38  ;;  %v911_v51 = vmul.f32 %v2076_v29, %v910_v43  ;;  %v939_v33 = vor.u32 1.1754944e-38, %v938_v30 }
 0x143   : > { %v1649_v48 = vpop.eup %1648  ;;  %vm937_vm7 = vcmp.eq.f32.partialorder %v936_v31, 8.507059e+37 }
 0x144   : > { %v2110_v52 = vpop.eup %1650  ;;  %v1007_v54 = vsel %vm2105_vm10, %v1645_v23, %v1003_v47  ;;  %v1023_v56 = vmul.f32 %v1649_v48, %v2068_v24  ;;  %v912_v60 = vadd.f32 %v2076_v29, %v911_v51  ;;  %vm1028_vm14 = vweird.f32 %v1649_v48 }
 0x145   : > { %v928_v0 = vmul.f32 %v2110_v52, %v2066_v22  ;;  %v1012_v3 = vsel %vm1009_vm11, %v1011_v58, %v1007_v54  ;;  %vm1029_vm1 = vmor %vm1027_vm0, %vm1028_vm14  ;;  %v1653_v24 = vpop.eup %1652  ;;  %vm933_vm4 = vweird.f32 %v2110_v52 }
 0x146   : > { %v1024_v62 = vsub.f32 1.0, %v1023_v56  ;;  %v916_v10 = vsel %vm2126_vm15, %v2076_v29, %v912_v60  ;;  %v1015_v12 = vmul.f32 %v1014_v4, %v1012_v3  ;;  %vm934_vm6 = vmor %vm932_vm5, %vm933_vm4 }
 0x147   : > { %v929_v13 = vsub.f32 1.0, %v928_v0  ;;  %v921_v19 = vsel %vm918_vm2, %v920_v14, %v916_v10 }
 0x148   : > { %v1025_v5 = vmul.f32 %v1649_v48, %v1024_v62  ;;  %v1016_v20 = vadd.f32 %v1015_v12, %v993_v17  ;;  %v1040_v26 = vmul.f32 %v1653_v24, %v921_v19 }
 0x149   : > { %v930_v25 = vmul.f32 %v2110_v52, %v929_v13 }
 0x14a   : > { %v1026_v11 = vadd.f32 %v1649_v48, %v1025_v5 }
 0x14b   : > { %v931_v29 = vadd.f32 %v2110_v52, %v930_v25 }
 0x14c   : > { %v1030_v18 = vsel %vm1029_vm1, %v1649_v48, %v1026_v11 }
 0x14d   : > { %v1035_v21 = vsel %vm1032_vm3, %v1034_v16, %v1030_v18  ;;  %v935_v32 = vsel %vm934_vm6, %v2110_v52, %v931_v29 }
 0x14e   : > { %v1038_v23 = vmul.f32 %v1037_v15, %v1035_v21  ;;  %v940_v35 = vsel %vm937_vm7, %v939_v33, %v935_v32 }
 0x150   : > { %v1039_v27 = vadd.f32 %v1038_v23, %v1016_v20 }
 0x152   : > { %v1041_v28 = vadd.f32 %v1040_v26, %v1039_v27 }
 0x154   : > { %1654 = vtanh.f32 %v1041_v28  ;;  %1046 = vst [vmem:[%s1045_s23] sm:$0xff] %v1041_v28 }
 0x155   : > { %1550 = dma.vmem_to_hbm [thread:$0]  (%p1573_p3), %s1055_s19, 512, %s1057_s21, [#allocation8], %s1879_s24, %s1879_s24, %s1880_s0  }
 0x15a   : > { %v1655_v34 = vpop.eup %1654 }
 0x15b   : > { %v1043_v36 = vmul.f32 %v1655_v34, %v940_v35 }
 0x15d   : > { %1048 = vst [vmem:[%s1047_s18] sm:$0xff] %v1043_v36 }
 0x15e   : > { %1552 = dma.vmem_to_hbm [thread:$0]  (%p1573_p3), %s1069_s10, 512, %s1071_s15, [#allocation14], %s1879_s24, %s1879_s24, %s1880_s0  }
 0x15f   : > { %1845 = dma.done.wait (%p1573_p3), [#allocation8], 512  }
 0x160   : > { %1847 = vsyncadd (%p1573_p3), [#allocation8], 4294966784 }
 0x161   : > { %1849 = dma.done.wait (%p1573_p3), [#allocation14], 512  }
 0x162   : > { %1851 = vsyncadd (%p1573_p3), [#allocation14], 4294966784 }
 0x163 PF: > { %p29_p4 = scmp.ge.s32.totalorder %s1967_s22, 5   ;;  %s2197_s28 = smov %s1858_s29 }
 0x164   : > { %s2198_s29 = smov %s1862_s30  ;;  %s2199_s30 = smov %s1978_s25 }
 0x165   : > { %s2200_s8 = smov %s1967_s22  ;;  %31 = sbr.rel (!%p29_p4) target bundleno = 12 (0xc), region = 133 }
 0x16a   :  { %1092 = vsyncpa [#allocation7], 1 }
 0x16b   :  { %1094 = vsyncpa [#allocation7 + $0x1], 1 }
 0x16c   :  { %1095 = vsyncpa [#allocation10], 1 }
 0x16d   :  { %1096 = vsyncpa [#allocation8], 1 }
 0x16e   :  { %1098 = vsyncpa [#allocation8 + $0x1], 1 }
 0x16f   :  { %1099 = vsyncpa [#allocation14], 1 }

</bundles_post_ra>
